<compile_context>
chip_gen: v7x
topology: tpu7x:2x2x1
jax: 0.10.0
libtpu: 0.0.40
codegen_flags: <defaults>
</compile_context>

<pallas_src>
import functools

import jax
import jax.numpy as jnp
from jax import lax
from jax.experimental import pallas as pl
from jax.experimental.pallas import tpu as pltpu


# ------------------------------- fused kernel --------------------------------
def _mbconv_kernel(*refs, H, W, B, Cin_p, Chid_p, Cout_p, K, pad, expand,
                   use_residual, use_im2col, mxu_dtype):
    HW = H * W
    L = B * HW
    patch_ref = None
    if expand:
        if use_im2col:
            (x_ref, ew_ref, eb_ref, dww_ref, dwb_ref, w1t_ref, b1_ref,
             w2_ref, b2_ref, pww_ref, pwb_ref, o_ref, patch_ref) = refs
        else:
            (x_ref, ew_ref, eb_ref, dww_ref, dwb_ref, w1t_ref, b1_ref,
             w2_ref, b2_ref, pww_ref, pwb_ref, o_ref) = refs
    else:
        (x_ref, dww_ref, dwb_ref, w1t_ref, b1_ref, w2_ref, b2_ref,
         pww_ref, pwb_ref, o_ref) = refs

    def mdot(a, b):
        # f32 operands at toy shapes; cast to bf16 (mxu_dtype) at production sizes.
        return jnp.dot(a.astype(mxu_dtype), b.astype(mxu_dtype),
                       preferred_element_type=jnp.float32)

    x = x_ref[0]                                           # (Cin_p, L) channel-major

    # ---- hoisted lane-position indices & memoized per-tap validity masks --------
    p2 = lambda n: (n & (n - 1)) == 0
    idx = lax.broadcasted_iota(jnp.int32, (1, L), 1)
    q = (idx & (HW - 1)) if p2(HW) else (idx % HW)         # offset within its image
    col = (q & (W - 1)) if p2(W) else (q % W)
    row = (q >> (W.bit_length() - 1)) if p2(W) else (q // W)

    row_masks, col_masks, tap_masks = {}, {}, {}

    def tap_mask(dr, dc):
        key = (dr, dc)
        if key not in tap_masks:
            if dr not in row_masks:
                row_masks[dr] = None if dr == 0 else (
                    (row < H - dr) if dr > 0 else (row >= -dr))
            if dc not in col_masks:
                col_masks[dc] = None if dc == 0 else (
                    (col < W - dc) if dc > 0 else (col >= -dc))
            rm, cm = row_masks[dr], col_masks[dc]
            tap_masks[key] = rm if cm is None else (cm if rm is None else rm & cm)
        return tap_masks[key]

    def shifted(v, dr, dc):
        # out[:, b*HW + i*W + j] = v[:, b*HW + (i+dr)*W + (j+dc)], zero when the tap
        # leaves image b.  The rotation runs on the XLU slot; masking is one VPU select.
        s = dr * W + dc
        u = pltpu.roll(v, shift=(-s) % L, axis=1) if s != 0 else v
        m = tap_mask(dr, dc)
        return u if m is None else jnp.where(m, u, 0.0)

    # --- 1) expand 3x3 conv (stride 1, pad 1), BN scale pre-folded into weights ---
    if expand:
        ew = ew_ref[...]                                   # (Chid_p, 9*Cin_p)
        if use_im2col:
            for kh in range(3):
                for kw in range(3):
                    kidx = kh * 3 + kw
                    patch_ref[kidx * Cin_p:(kidx + 1) * Cin_p, :] = shifted(x, kh - 1, kw - 1)
            y = mdot(ew, patch_ref[...])                   # one deep MXU matmul
        else:
            # per-tap accumulating matmuls: no (9*Cin_p, L) scratch (v7x VMEM friendly)
            y = jnp.zeros((Chid_p, L), jnp.float32)
            for kh in range(3):
                for kw in range(3):
                    kidx = kh * 3 + kw
                    y = y + mdot(ew[:, kidx * Cin_p:(kidx + 1) * Cin_p],
                                 shifted(x, kh - 1, kw - 1))
        y = y + eb_ref[...]                                # folded-BN bias
        y = y * jax.nn.sigmoid(y)                          # SiLU
    else:
        y = x[:Chid_p, :]

    # --- 2) depthwise KxK conv (stride 1, "same" padding) on the VPU --------------
    dww = dww_ref[...]                                     # (Chid_p, K*K), loaded once
    acc = jnp.zeros((Chid_p, L), jnp.float32)
    for kh in range(K):
        for kw in range(K):
            i = kh * K + kw
            acc = acc + dww[:, i:i + 1] * shifted(y, kh - pad, kw - pad)
    a = acc + dwb_ref[...]                                 # folded-BN bias
    a = a * jax.nn.sigmoid(a)                              # SiLU

    # --- 3) Squeeze-Excitation (per image; tiny, VPU/XLU only) --------------------
    w1t = w1t_ref[...]
    b1 = b1_ref[...]
    w2 = w2_ref[...]
    b2 = b2_ref[...]
    inv_hw = 1.0 / HW
    gates = []
    for b in range(B):
        sl = a[:, b * HW:(b + 1) * HW]
        pooled = jnp.sum(sl, axis=1, keepdims=True) * inv_hw           # (Chid_p, 1)
        h1 = jnp.sum(w1t * pooled, axis=0, keepdims=True) + b1         # (1, Cred)
        h1 = h1 * jax.nn.sigmoid(h1)
        g = jax.nn.sigmoid(jnp.sum(w2 * h1, axis=1, keepdims=True) + b2)  # (Chid_p, 1)
        gates.append(g if B == 1 else jnp.broadcast_to(g, (Chid_p, HW)))
    a = a * (gates[0] if B == 1 else jnp.concatenate(gates, axis=1))

    # --- 4) 1x1 projection conv + BN (+ residual; stochastic_depth = identity) ----
    out = mdot(pww_ref[...], a) + pwb_ref[...]                         # (Cout_p, L)
    if use_residual:
        out = out + x[:Cout_p, :]
    o_ref[0] = out.astype(o_ref.dtype)


# --------------------------------- wrapper -----------------------------------
def _pad_axis(a, axis, new_size):
    extra = new_size - a.shape[axis]
    if extra == 0:
        return a
    widths = [(0, 0)] * a.ndim
    widths[axis] = (0, extra)
    return jnp.pad(a, widths)


def inverted_residual_block(x_nchw, p, *, Cout, K, stride, padding, expand_ratio,
                            images_per_step=None, use_im2col=True,
                            mxu_dtype=jnp.float32):
    N, Cin, H, W = x_nchw.shape
    Chid = Cin * expand_ratio
    expand = Cin != Chid
    use_residual = (Cin == Cout) and (stride == 1)
    if stride != 1 or 2 * padding != K - 1:
        # TODO(synk): stride>1 / non-"same" depthwise path needs output-indexed gathers;
        # only the stride-1 same-padding MBConv configuration is fused here.
        raise NotImplementedError("fused kernel supports stride == 1 and 2*padding == K-1")

    HW = H * W
    if images_per_step is None:
        # Default: whole batch in one grid step (widest lanes; best on single-TC
        # v5e/v6e).  On v7x pass images_per_step = N // 2 so both TensorCores get work.
        images_per_step = N
    B = images_per_step
    if N % B != 0:
        raise ValueError("images_per_step must divide the batch")
    G = N // B
    L = B * HW

    rnd8 = lambda c: ((c + 7) // 8) * 8           # sublane-align all channel dims (f32)
    Cin_p, Chid_p, Cout_p = rnd8(Cin), rnd8(Chid), rnd8(Cout)
    Cred = p["se_w1"].shape[0]

    # ---- activations: (N, Cin, H, W) -> (G, Cin_p, B*HW) channel-major lane slabs
    x_k = _pad_axis(x_nchw.reshape(N, Cin, HW), 1, Cin_p)
    x_k = x_k.reshape(G, B, Cin_p, HW).transpose(0, 2, 1, 3).reshape(G, Cin_p, L)

    args = [x_k]
    in_specs = [pl.BlockSpec((1, Cin_p, L), lambda g: (g, 0, 0))]
    scratch_shapes = []

    if expand:
        # fold BN scale into the 3x3 expand weight; order columns as (kh, kw, cin)
        ew = p["exp_w"] * p["exp_scale"][:, None, None, None]          # (Chid,Cin,3,3)
        ew = jnp.transpose(ew, (0, 2, 3, 1))                           # (Chid,3,3,Cin)
        ew = _pad_axis(ew, 3, Cin_p).reshape(Chid, 9 * Cin_p)
        ew = _pad_axis(ew, 0, Chid_p)
        eb = _pad_axis(p["exp_bias"].reshape(Chid, 1), 0, Chid_p)
        args += [ew, eb]
        in_specs += [pl.BlockSpec((Chid_p, 9 * Cin_p), lambda g: (0, 0)),
                     pl.BlockSpec((Chid_p, 1), lambda g: (0, 0))]
        if use_im2col:
            scratch_shapes = [pltpu.VMEM((9 * Cin_p, L), jnp.float32)]  # im2col buffer

    dww = _pad_axis(p["dw_w"].reshape(Chid, K * K) * p["dw_scale"][:, None], 0, Chid_p)
    dwb = _pad_axis(p["dw_bias"].reshape(Chid, 1), 0, Chid_p)
    w1t = _pad_axis(jnp.transpose(p["se_w1"]), 0, Chid_p)              # (Chid_p, Cred)
    b1 = p["se_b1"].reshape(1, Cred)
    w2 = _pad_axis(p["se_w2"], 0, Chid_p)                              # (Chid_p, Cred)
    b2 = _pad_axis(p["se_b2"].reshape(Chid, 1), 0, Chid_p)
    pww = _pad_axis(_pad_axis(p["pw_w"] * p["pw_scale"][:, None], 1, Chid_p), 0, Cout_p)
    pwb = _pad_axis(p["pw_bias"].reshape(Cout, 1), 0, Cout_p)

    args += [dww, dwb, w1t, b1, w2, b2, pww, pwb]
    in_specs += [pl.BlockSpec((Chid_p, K * K), lambda g: (0, 0)),
                 pl.BlockSpec((Chid_p, 1), lambda g: (0, 0)),
                 pl.BlockSpec((Chid_p, Cred), lambda g: (0, 0)),
                 pl.BlockSpec((1, Cred), lambda g: (0, 0)),
                 pl.BlockSpec((Chid_p, Cred), lambda g: (0, 0)),
                 pl.BlockSpec((Chid_p, 1), lambda g: (0, 0)),
                 pl.BlockSpec((Cout_p, Chid_p), lambda g: (0, 0)),
                 pl.BlockSpec((Cout_p, 1), lambda g: (0, 0))]

    kernel = functools.partial(
        _mbconv_kernel, H=H, W=W, B=B, Cin_p=Cin_p, Chid_p=Chid_p, Cout_p=Cout_p,
        K=K, pad=padding, expand=expand, use_residual=use_residual,
        use_im2col=use_im2col, mxu_dtype=mxu_dtype)

    out = pl.pallas_call(
        kernel,
        out_shape=jax.ShapeDtypeStruct((G, Cout_p, L), x_nchw.dtype),
        grid=(G,),
        in_specs=in_specs,
        out_specs=pl.BlockSpec((1, Cout_p, L), lambda g: (g, 0, 0)),
        scratch_shapes=scratch_shapes,
        compiler_params=pltpu.CompilerParams(
            dimension_semantics=("parallel",),
            vmem_limit_bytes=32 * 1024 * 1024),
    )(*args)

    out = out.reshape(G, Cout_p, B, HW).transpose(0, 2, 1, 3).reshape(N, Cout_p, HW)
    return out[:, :Cout, :].reshape(N, Cout, H, W)


# -------------------------- deterministic parameters -------------------------
def _folded_bn(keys, C):
    kg, kb, km, kv = keys
    gamma = 1.0 + 0.1 * jax.random.normal(kg, (C,), jnp.float32)
    beta = 0.1 * jax.random.normal(kb, (C,), jnp.float32)
    mean = 0.1 * jax.random.normal(km, (C,), jnp.float32)
    var = jnp.abs(jax.random.normal(kv, (C,), jnp.float32)) + 0.5
    scale = gamma * lax.rsqrt(var + 1e-5)
    bias = beta - mean * scale
    return scale, bias


def init_params(key, Cin, Cout, K, expand_ratio, reduction):
    Chid = Cin * expand_ratio
    Cred = int(Cin / reduction)
    ks = jax.random.split(key, 19)
    p = {}
    p["exp_w"] = 0.2 * jax.random.normal(ks[0], (Chid, Cin, 3, 3), jnp.float32)
    p["exp_scale"], p["exp_bias"] = _folded_bn(ks[1:5], Chid)
    p["dw_w"] = 0.2 * jax.random.normal(ks[5], (Chid, 1, K, K), jnp.float32)
    p["dw_scale"], p["dw_bias"] = _folded_bn(ks[6:10], Chid)
    p["se_w1"] = 0.2 * jax.random.normal(ks[10], (Cred, Chid), jnp.float32)
    p["se_b1"] = 0.1 * jax.random.normal(ks[11], (Cred,), jnp.float32)
    p["se_w2"] = 0.2 * jax.random.normal(ks[12], (Chid, Cred), jnp.float32)
    p["se_b2"] = 0.1 * jax.random.normal(ks[13], (Chid,), jnp.float32)
    p["pw_w"] = 0.2 * jax.random.normal(ks[14], (Cout, Chid), jnp.float32)
    p["pw_scale"], p["pw_bias"] = _folded_bn(ks[15:19], Cout)
    return p


# ----------------------------- pure-JAX reference ----------------------------
def reference_forward(x_nchw, p, *, K, stride, padding, expand, use_residual):
    x = jnp.transpose(x_nchw, (0, 2, 3, 1))                     # NHWC
    y = x
    if expand:
        w = jnp.transpose(p["exp_w"], (2, 3, 1, 0))             # HWIO
        y = lax.conv_general_dilated(y, w, (1, 1), ((1, 1), (1, 1)),
                                     dimension_numbers=("NHWC", "HWIO", "NHWC"))
        y = y * p["exp_scale"] + p["exp_bias"]
        y = y * jax.nn.sigmoid(y)
    Chid = y.shape[-1]
    dw = jnp.transpose(p["dw_w"], (2, 3, 1, 0))                 # (K,K,1,Chid)
    a = lax.conv_general_dilated(y, dw, (stride, stride),
                                 ((padding, padding), (padding, padding)),
                                 dimension_numbers=("NHWC", "HWIO", "NHWC"),
                                 feature_group_count=Chid)
    a = a * p["dw_scale"] + p["dw_bias"]
    a = a * jax.nn.sigmoid(a)
    pooled = jnp.mean(a, axis=(1, 2))                           # (N, Chid)
    h1 = pooled @ p["se_w1"].T + p["se_b1"]                     # (N, Cred)
    h1 = h1 * jax.nn.sigmoid(h1)
    gate = jax.nn.sigmoid(h1 @ p["se_w2"].T + p["se_b2"])       # (N, Chid)
    a = a * gate[:, None, None, :]
    y2 = jnp.einsum("nhwc,oc->nhwo", a, p["pw_w"])
    y2 = y2 * p["pw_scale"] + p["pw_bias"]
    if use_residual:
        y2 = y2 + x
    return jnp.transpose(y2, (0, 3, 1, 2))                      # NCHW


# ----------------------------------- main -------------------------------------
if __name__ == "__main__":
    # Module config: InvertedResidualBlock(4, 4, kernel_size=3, stride=1,
    #                                      padding=1, expand_ratio=2, reduction=4)
    N, Cin, H, W = 2, 4, 16, 16
    Cout, K, stride, padding = 4, 3, 1, 1
    expand_ratio, reduction = 2, 4

    key = jax.random.PRNGKey(0)
    kx, kp = jax.random.split(key)
    x = jax.random.normal(kx, (N, Cin, H, W), jnp.float32)      # NCHW like PyTorch
    params = init_params(kp, Cin, Cout, K, expand_ratio, reduction)

    expand = Cin != Cin * expand_ratio
    use_residual = (Cin == Cout) and (stride == 1)
    ref = reference_forward(x, params, K=K, stride=stride, padding=padding,
                            expand=expand, use_residual=use_residual)

    configs = [
        dict(images_per_step=N, use_im2col=True),    # 1 grid step, 512 lanes (v5e/v6e)
        dict(images_per_step=1, use_im2col=True),    # 1 image/step, 2-way grid (v7x TCs)
        dict(images_per_step=N, use_im2col=False),   # per-tap matmuls, no im2col scratch
    ]
    for cfg in configs:
        y = inverted_residual_block(x, params, Cout=Cout, K=K, stride=stride,
                                    padding=padding, expand_ratio=expand_ratio, **cfg)
        y = jax.block_until_ready(y)
        assert y.shape == (N, Cout, H, W), (cfg, y.shape)
        err = float(jnp.max(jnp.abs(y - ref)))
        assert jnp.allclose(y, ref, atol=1e-3, rtol=1e-3), (cfg, err)

    print("KERNEL_OK")
</pallas_src>

<mosaic_0001>
module attributes {stable_mosaic.version = 11 : i64} {
  func.func @_mbconv_kernel(%arg0: i32, %arg1: memref<1x8x512xf32, #tpu.memory_space<vmem>>, %arg2: memref<8x72xf32, #tpu.memory_space<vmem>>, %arg3: memref<8x1xf32, #tpu.memory_space<vmem>>, %arg4: memref<8x9xf32, #tpu.memory_space<vmem>>, %arg5: memref<8x1xf32, #tpu.memory_space<vmem>>, %arg6: memref<8x1xf32, #tpu.memory_space<vmem>>, %arg7: memref<1x1xf32, #tpu.memory_space<vmem>>, %arg8: memref<8x1xf32, #tpu.memory_space<vmem>>, %arg9: memref<8x1xf32, #tpu.memory_space<vmem>>, %arg10: memref<8x8xf32, #tpu.memory_space<vmem>>, %arg11: memref<8x1xf32, #tpu.memory_space<vmem>>, %arg12: memref<1x8x512xf32, #tpu.memory_space<vmem>>, %arg13: memref<72x512xf32, #tpu.memory_space<vmem>>) attributes {dimension_semantics = [#tpu.dimension_semantics<parallel>], iteration_bounds = array<i64: 1>, scalar_prefetch = 0 : i64, scratch_operands = 1 : i64, tpu.core_type = #tpu.core_type<tc>, window_params = [{transform_indices = @transform_0, window_bounds = array<i64: 1, 8, 512>}, {pipeline_mode = #tpu.pipeline_mode<synchronous>, transform_indices = @transform_1, window_bounds = array<i64: 8, 72>}, {pipeline_mode = #tpu.pipeline_mode<synchronous>, transform_indices = @transform_2, window_bounds = array<i64: 8, 1>}, {pipeline_mode = #tpu.pipeline_mode<synchronous>, transform_indices = @transform_3, window_bounds = array<i64: 8, 9>}, {pipeline_mode = #tpu.pipeline_mode<synchronous>, transform_indices = @transform_4, window_bounds = array<i64: 8, 1>}, {pipeline_mode = #tpu.pipeline_mode<synchronous>, transform_indices = @transform_5, window_bounds = array<i64: 8, 1>}, {pipeline_mode = #tpu.pipeline_mode<synchronous>, transform_indices = @transform_6, window_bounds = array<i64: 1, 1>}, {pipeline_mode = #tpu.pipeline_mode<synchronous>, transform_indices = @transform_7, window_bounds = array<i64: 8, 1>}, {pipeline_mode = #tpu.pipeline_mode<synchronous>, transform_indices = @transform_8, window_bounds = array<i64: 8, 1>}, {pipeline_mode = #tpu.pipeline_mode<synchronous>, transform_indices = @transform_9, window_bounds = array<i64: 8, 8>}, {pipeline_mode = #tpu.pipeline_mode<synchronous>, transform_indices = @transform_10, window_bounds = array<i64: 8, 1>}, {transform_indices = @transform_11, window_bounds = array<i64: 1, 8, 512>}]} {
    %c0 = arith.constant 0 : index
    %c0_0 = arith.constant 0 : index
    %c0_1 = arith.constant 0 : index
    %0 = vector.load %arg1[%c0, %c0_0, %c0_1] : memref<1x8x512xf32, #tpu.memory_space<vmem>>, vector<1x8x512xf32>
    %1 = vector.shape_cast %0 : vector<1x8x512xf32> to vector<8x512xf32>
    %2 = tpu.iota {dimensions = array<i32: 1>} : vector<1x512xi32>
    %c255_i32 = arith.constant 255 : i32
    %3 = vector.broadcast %c255_i32 : i32 to vector<1x512xi32>
    %4 = arith.andi %2, %3 : vector<1x512xi32>
    %c15_i32 = arith.constant 15 : i32
    %5 = vector.broadcast %c15_i32 : i32 to vector<1x512xi32>
    %6 = arith.andi %4, %5 : vector<1x512xi32>
    %c4_i32 = arith.constant 4 : i32
    %7 = vector.broadcast %c4_i32 : i32 to vector<1x512xi32>
    %8 = arith.shrsi %4, %7 : vector<1x512xi32>
    %c0_2 = arith.constant 0 : index
    %c0_3 = arith.constant 0 : index
    %9 = vector.load %arg2[%c0_2, %c0_3] : memref<8x72xf32, #tpu.memory_space<vmem>>, vector<8x72xf32>
    %c17_i32 = arith.constant 17 : i32
    %10 = tpu.dynamic_rotate %1 by %c17_i32 dim 1 : vector<8x512xf32>, i32 -> vector<8x512xf32>
    %c1_i32 = arith.constant 1 : i32
    %11 = vector.broadcast %c1_i32 : i32 to vector<1x512xi32>
    %12 = arith.cmpi sge, %8, %11 : vector<1x512xi32>
    %c1_i32_4 = arith.constant 1 : i32
    %13 = vector.broadcast %c1_i32_4 : i32 to vector<1x512xi32>
    %14 = arith.cmpi sge, %6, %13 : vector<1x512xi32>
    %15 = arith.andi %12, %14 : vector<1x512xi1>
    %cst = arith.constant 0.000000e+00 : f32
    %16 = vector.shape_cast %15 : vector<1x512xi1> to vector<1x512xi1>
    %17 = vector.broadcast %16 : vector<1x512xi1> to vector<8x512xi1>
    %18 = vector.broadcast %cst : f32 to vector<8x512xf32>
    %19 = arith.select %17, %10, %18 : vector<8x512xi1>, vector<8x512xf32>
    %c0_5 = arith.constant 0 : index
    %c0_6 = arith.constant 0 : index
    %20 = vector.load %arg13[%c0_5, %c0_6] : memref<72x512xf32, #tpu.memory_space<vmem>>, vector<8x512xf32>
    tpu.vector_store %arg13[%c0_5, %c0_6], %19 {strides = array<i32>} : memref<72x512xf32, #tpu.memory_space<vmem>>, vector<8x512xf32>,
    %c16_i32 = arith.constant 16 : i32
    %21 = tpu.dynamic_rotate %1 by %c16_i32 dim 1 : vector<8x512xf32>, i32 -> vector<8x512xf32>
    %cst_7 = arith.constant 0.000000e+00 : f32
    %22 = vector.shape_cast %12 : vector<1x512xi1> to vector<1x512xi1>
    %23 = vector.broadcast %22 : vector<1x512xi1> to vector<8x512xi1>
    %24 = vector.broadcast %cst_7 : f32 to vector<8x512xf32>
    %25 = arith.select %23, %21, %24 : vector<8x512xi1>, vector<8x512xf32>
    %c8 = arith.constant 8 : index
    %c0_8 = arith.constant 0 : index
    %26 = vector.load %arg13[%c8, %c0_8] : memref<72x512xf32, #tpu.memory_space<vmem>>, vector<8x512xf32>
    tpu.vector_store %arg13[%c8, %c0_8], %25 {strides = array<i32>} : memref<72x512xf32, #tpu.memory_space<vmem>>, vector<8x512xf32>,
    %c15_i32_9 = arith.constant 15 : i32
    %27 = tpu.dynamic_rotate %1 by %c15_i32_9 dim 1 : vector<8x512xf32>, i32 -> vector<8x512xf32>
    %c15_i32_10 = arith.constant 15 : i32
    %28 = vector.broadcast %c15_i32_10 : i32 to vector<1x512xi32>
    %29 = arith.cmpi slt, %6, %28 : vector<1x512xi32>
    %30 = arith.andi %12, %29 : vector<1x512xi1>
    %cst_11 = arith.constant 0.000000e+00 : f32
    %31 = vector.shape_cast %30 : vector<1x512xi1> to vector<1x512xi1>
    %32 = vector.broadcast %31 : vector<1x512xi1> to vector<8x512xi1>
    %33 = vector.broadcast %cst_11 : f32 to vector<8x512xf32>
    %34 = arith.select %32, %27, %33 : vector<8x512xi1>, vector<8x512xf32>
    %c16 = arith.constant 16 : index
    %c0_12 = arith.constant 0 : index
    %35 = vector.load %arg13[%c16, %c0_12] : memref<72x512xf32, #tpu.memory_space<vmem>>, vector<8x512xf32>
    tpu.vector_store %arg13[%c16, %c0_12], %34 {strides = array<i32>} : memref<72x512xf32, #tpu.memory_space<vmem>>, vector<8x512xf32>,
    %c1_i32_13 = arith.constant 1 : i32
    %36 = tpu.dynamic_rotate %1 by %c1_i32_13 dim 1 : vector<8x512xf32>, i32 -> vector<8x512xf32>
    %cst_14 = arith.constant 0.000000e+00 : f32
    %37 = vector.shape_cast %14 : vector<1x512xi1> to vector<1x512xi1>
    %38 = vector.broadcast %37 : vector<1x512xi1> to vector<8x512xi1>
    %39 = vector.broadcast %cst_14 : f32 to vector<8x512xf32>
    %40 = arith.select %38, %36, %39 : vector<8x512xi1>, vector<8x512xf32>
    %c24 = arith.constant 24 : index
    %c0_15 = arith.constant 0 : index
    %41 = vector.load %arg13[%c24, %c0_15] : memref<72x512xf32, #tpu.memory_space<vmem>>, vector<8x512xf32>
    tpu.vector_store %arg13[%c24, %c0_15], %40 {strides = array<i32>} : memref<72x512xf32, #tpu.memory_space<vmem>>, vector<8x512xf32>,
    %c32 = arith.constant 32 : index
    %c0_16 = arith.constant 0 : index
    %42 = vector.load %arg13[%c32, %c0_16] : memref<72x512xf32, #tpu.memory_space<vmem>>, vector<8x512xf32>
    tpu.vector_store %arg13[%c32, %c0_16], %1 {strides = array<i32>} : memref<72x512xf32, #tpu.memory_space<vmem>>, vector<8x512xf32>,
    %c511_i32 = arith.constant 511 : i32
    %43 = tpu.dynamic_rotate %1 by %c511_i32 dim 1 : vector<8x512xf32>, i32 -> vector<8x512xf32>
    %cst_17 = arith.constant 0.000000e+00 : f32
    %44 = vector.shape_cast %29 : vector<1x512xi1> to vector<1x512xi1>
    %45 = vector.broadcast %44 : vector<1x512xi1> to vector<8x512xi1>
    %46 = vector.broadcast %cst_17 : f32 to vector<8x512xf32>
    %47 = arith.select %45, %43, %46 : vector<8x512xi1>, vector<8x512xf32>
    %c40 = arith.constant 40 : index
    %c0_18 = arith.constant 0 : index
    %48 = vector.load %arg13[%c40, %c0_18] : memref<72x512xf32, #tpu.memory_space<vmem>>, vector<8x512xf32>
    tpu.vector_store %arg13[%c40, %c0_18], %47 {strides = array<i32>} : memref<72x512xf32, #tpu.memory_space<vmem>>, vector<8x512xf32>,
    %c497_i32 = arith.constant 497 : i32
    %49 = tpu.dynamic_rotate %1 by %c497_i32 dim 1 : vector<8x512xf32>, i32 -> vector<8x512xf32>
    %c15_i32_19 = arith.constant 15 : i32
    %50 = vector.broadcast %c15_i32_19 : i32 to vector<1x512xi32>
    %51 = arith.cmpi slt, %8, %50 : vector<1x512xi32>
    %52 = arith.andi %51, %14 : vector<1x512xi1>
    %cst_20 = arith.constant 0.000000e+00 : f32
    %53 = vector.shape_cast %52 : vector<1x512xi1> to vector<1x512xi1>
    %54 = vector.broadcast %53 : vector<1x512xi1> to vector<8x512xi1>
    %55 = vector.broadcast %cst_20 : f32 to vector<8x512xf32>
    %56 = arith.select %54, %49, %55 : vector<8x512xi1>, vector<8x512xf32>
    %c48 = arith.constant 48 : index
    %c0_21 = arith.constant 0 : index
    %57 = vector.load %arg13[%c48, %c0_21] : memref<72x512xf32, #tpu.memory_space<vmem>>, vector<8x512xf32>
    tpu.vector_store %arg13[%c48, %c0_21], %56 {strides = array<i32>} : memref<72x512xf32, #tpu.memory_space<vmem>>, vector<8x512xf32>,
    %c496_i32 = arith.constant 496 : i32
    %58 = tpu.dynamic_rotate %1 by %c496_i32 dim 1 : vector<8x512xf32>, i32 -> vector<8x512xf32>
    %cst_22 = arith.constant 0.000000e+00 : f32
    %59 = vector.shape_cast %51 : vector<1x512xi1> to vector<1x512xi1>
    %60 = vector.broadcast %59 : vector<1x512xi1> to vector<8x512xi1>
    %61 = vector.broadcast %cst_22 : f32 to vector<8x512xf32>
    %62 = arith.select %60, %58, %61 : vector<8x512xi1>, vector<8x512xf32>
    %c56 = arith.constant 56 : index
    %c0_23 = arith.constant 0 : index
    %63 = vector.load %arg13[%c56, %c0_23] : memref<72x512xf32, #tpu.memory_space<vmem>>, vector<8x512xf32>
    tpu.vector_store %arg13[%c56, %c0_23], %62 {strides = array<i32>} : memref<72x512xf32, #tpu.memory_space<vmem>>, vector<8x512xf32>,
    %c495_i32 = arith.constant 495 : i32
    %64 = tpu.dynamic_rotate %1 by %c495_i32 dim 1 : vector<8x512xf32>, i32 -> vector<8x512xf32>
    %65 = arith.andi %51, %29 : vector<1x512xi1>
    %cst_24 = arith.constant 0.000000e+00 : f32
    %66 = vector.shape_cast %65 : vector<1x512xi1> to vector<1x512xi1>
    %67 = vector.broadcast %66 : vector<1x512xi1> to vector<8x512xi1>
    %68 = vector.broadcast %cst_24 : f32 to vector<8x512xf32>
    %69 = arith.select %67, %64, %68 : vector<8x512xi1>, vector<8x512xf32>
    %c64 = arith.constant 64 : index
    %c0_25 = arith.constant 0 : index
    %70 = vector.load %arg13[%c64, %c0_25] : memref<72x512xf32, #tpu.memory_space<vmem>>, vector<8x512xf32>
    tpu.vector_store %arg13[%c64, %c0_25], %69 {strides = array<i32>} : memref<72x512xf32, #tpu.memory_space<vmem>>, vector<8x512xf32>,
    %c0_26 = arith.constant 0 : index
    %c0_27 = arith.constant 0 : index
    %71 = vector.load %arg13[%c0_26, %c0_27] : memref<72x512xf32, #tpu.memory_space<vmem>>, vector<72x512xf32>
    %cst_28 = arith.constant dense<0.000000e+00> : vector<8x512xf32>
    %72 = tpu.matmul %9, %71, %cst_28 {dimension_numbers = #tpu.dot_dimension_numbers<[1], [0], [0], [1], [0, 0, 1, 1], [], []>} : vector<8x72xf32>, vector<72x512xf32>, vector<8x512xf32> -> vector<8x512xf32>
    %c0_29 = arith.constant 0 : index
    %c0_30 = arith.constant 0 : index
    %73 = vector.load %arg3[%c0_29, %c0_30] : memref<8x1xf32, #tpu.memory_space<vmem>>, vector<8x1xf32>
    %74 = vector.broadcast %73 : vector<8x1xf32> to vector<8x512xf32>
    %75 = arith.addf %72, %74 : vector<8x512xf32>
    %76 = arith.negf %75 : vector<8x512xf32>
    %77 = math.exp %76 : vector<8x512xf32>
    %cst_31 = arith.constant 1.000000e+00 : f32
    %78 = vector.broadcast %cst_31 : f32 to vector<8x512xf32>
    %79 = arith.addf %78, %77 : vector<8x512xf32>
    %80 = arith.divf %78, %79 : vector<8x512xf32>
    %81 = arith.mulf %75, %80 : vector<8x512xf32>
    %c0_32 = arith.constant 0 : index
    %c0_33 = arith.constant 0 : index
    %82 = vector.load %arg4[%c0_32, %c0_33] : memref<8x9xf32, #tpu.memory_space<vmem>>, vector<8x9xf32>
    %cst_34 = arith.constant 0.000000e+00 : f32
    %83 = vector.broadcast %cst_34 : f32 to vector<8x512xf32>
    %84 = vector.extract_strided_slice %82 {offsets = [0, 0], sizes = [8, 1], strides = [1, 1]} : vector<8x9xf32> to vector<8x1xf32>
    %c17_i32_35 = arith.constant 17 : i32
    %85 = tpu.dynamic_rotate %81 by %c17_i32_35 dim 1 : vector<8x512xf32>, i32 -> vector<8x512xf32>
    %cst_36 = arith.constant 0.000000e+00 : f32
    %86 = vector.shape_cast %15 : vector<1x512xi1> to vector<1x512xi1>
    %87 = vector.broadcast %86 : vector<1x512xi1> to vector<8x512xi1>
    %88 = vector.broadcast %cst_36 : f32 to vector<8x512xf32>
    %89 = arith.select %87, %85, %88 : vector<8x512xi1>, vector<8x512xf32>
    %90 = vector.broadcast %84 : vector<8x1xf32> to vector<8x512xf32>
    %91 = arith.mulf %90, %89 : vector<8x512xf32>
    %92 = arith.addf %83, %91 : vector<8x512xf32>
    %93 = vector.extract_strided_slice %82 {offsets = [0, 1], sizes = [8, 1], strides = [1, 1]} : vector<8x9xf32> to vector<8x1xf32>
    %c16_i32_37 = arith.constant 16 : i32
    %94 = tpu.dynamic_rotate %81 by %c16_i32_37 dim 1 : vector<8x512xf32>, i32 -> vector<8x512xf32>
    %cst_38 = arith.constant 0.000000e+00 : f32
    %95 = vector.shape_cast %12 : vector<1x512xi1> to vector<1x512xi1>
    %96 = vector.broadcast %95 : vector<1x512xi1> to vector<8x512xi1>
    %97 = vector.broadcast %cst_38 : f32 to vector<8x512xf32>
    %98 = arith.select %96, %94, %97 : vector<8x512xi1>, vector<8x512xf32>
    %99 = vector.broadcast %93 : vector<8x1xf32> to vector<8x512xf32>
    %100 = arith.mulf %99, %98 : vector<8x512xf32>
    %101 = arith.addf %92, %100 : vector<8x512xf32>
    %102 = vector.extract_strided_slice %82 {offsets = [0, 2], sizes = [8, 1], strides = [1, 1]} : vector<8x9xf32> to vector<8x1xf32>
    %c15_i32_39 = arith.constant 15 : i32
    %103 = tpu.dynamic_rotate %81 by %c15_i32_39 dim 1 : vector<8x512xf32>, i32 -> vector<8x512xf32>
    %cst_40 = arith.constant 0.000000e+00 : f32
    %104 = vector.shape_cast %30 : vector<1x512xi1> to vector<1x512xi1>
    %105 = vector.broadcast %104 : vector<1x512xi1> to vector<8x512xi1>
    %106 = vector.broadcast %cst_40 : f32 to vector<8x512xf32>
    %107 = arith.select %105, %103, %106 : vector<8x512xi1>, vector<8x512xf32>
    %108 = vector.broadcast %102 : vector<8x1xf32> to vector<8x512xf32>
    %109 = arith.mulf %108, %107 : vector<8x512xf32>
    %110 = arith.addf %101, %109 : vector<8x512xf32>
    %111 = vector.extract_strided_slice %82 {offsets = [0, 3], sizes = [8, 1], strides = [1, 1]} : vector<8x9xf32> to vector<8x1xf32>
    %c1_i32_41 = arith.constant 1 : i32
    %112 = tpu.dynamic_rotate %81 by %c1_i32_41 dim 1 : vector<8x512xf32>, i32 -> vector<8x512xf32>
    %cst_42 = arith.constant 0.000000e+00 : f32
    %113 = vector.shape_cast %14 : vector<1x512xi1> to vector<1x512xi1>
    %114 = vector.broadcast %113 : vector<1x512xi1> to vector<8x512xi1>
    %115 = vector.broadcast %cst_42 : f32 to vector<8x512xf32>
    %116 = arith.select %114, %112, %115 : vector<8x512xi1>, vector<8x512xf32>
    %117 = vector.broadcast %111 : vector<8x1xf32> to vector<8x512xf32>
    %118 = arith.mulf %117, %116 : vector<8x512xf32>
    %119 = arith.addf %110, %118 : vector<8x512xf32>
    %120 = vector.extract_strided_slice %82 {offsets = [0, 4], sizes = [8, 1], strides = [1, 1]} : vector<8x9xf32> to vector<8x1xf32>
    %121 = vector.broadcast %120 : vector<8x1xf32> to vector<8x512xf32>
    %122 = arith.mulf %121, %81 : vector<8x512xf32>
    %123 = arith.addf %119, %122 : vector<8x512xf32>
    %124 = vector.extract_strided_slice %82 {offsets = [0, 5], sizes = [8, 1], strides = [1, 1]} : vector<8x9xf32> to vector<8x1xf32>
    %c511_i32_43 = arith.constant 511 : i32
    %125 = tpu.dynamic_rotate %81 by %c511_i32_43 dim 1 : vector<8x512xf32>, i32 -> vector<8x512xf32>
    %cst_44 = arith.constant 0.000000e+00 : f32
    %126 = vector.shape_cast %29 : vector<1x512xi1> to vector<1x512xi1>
    %127 = vector.broadcast %126 : vector<1x512xi1> to vector<8x512xi1>
    %128 = vector.broadcast %cst_44 : f32 to vector<8x512xf32>
    %129 = arith.select %127, %125, %128 : vector<8x512xi1>, vector<8x512xf32>
    %130 = vector.broadcast %124 : vector<8x1xf32> to vector<8x512xf32>
    %131 = arith.mulf %130, %129 : vector<8x512xf32>
    %132 = arith.addf %123, %131 : vector<8x512xf32>
    %133 = vector.extract_strided_slice %82 {offsets = [0, 6], sizes = [8, 1], strides = [1, 1]} : vector<8x9xf32> to vector<8x1xf32>
    %c497_i32_45 = arith.constant 497 : i32
    %134 = tpu.dynamic_rotate %81 by %c497_i32_45 dim 1 : vector<8x512xf32>, i32 -> vector<8x512xf32>
    %cst_46 = arith.constant 0.000000e+00 : f32
    %135 = vector.shape_cast %52 : vector<1x512xi1> to vector<1x512xi1>
    %136 = vector.broadcast %135 : vector<1x512xi1> to vector<8x512xi1>
    %137 = vector.broadcast %cst_46 : f32 to vector<8x512xf32>
    %138 = arith.select %136, %134, %137 : vector<8x512xi1>, vector<8x512xf32>
    %139 = vector.broadcast %133 : vector<8x1xf32> to vector<8x512xf32>
    %140 = arith.mulf %139, %138 : vector<8x512xf32>
    %141 = arith.addf %132, %140 : vector<8x512xf32>
    %142 = vector.extract_strided_slice %82 {offsets = [0, 7], sizes = [8, 1], strides = [1, 1]} : vector<8x9xf32> to vector<8x1xf32>
    %c496_i32_47 = arith.constant 496 : i32
    %143 = tpu.dynamic_rotate %81 by %c496_i32_47 dim 1 : vector<8x512xf32>, i32 -> vector<8x512xf32>
    %cst_48 = arith.constant 0.000000e+00 : f32
    %144 = vector.shape_cast %51 : vector<1x512xi1> to vector<1x512xi1>
    %145 = vector.broadcast %144 : vector<1x512xi1> to vector<8x512xi1>
    %146 = vector.broadcast %cst_48 : f32 to vector<8x512xf32>
    %147 = arith.select %145, %143, %146 : vector<8x512xi1>, vector<8x512xf32>
    %148 = vector.broadcast %142 : vector<8x1xf32> to vector<8x512xf32>
    %149 = arith.mulf %148, %147 : vector<8x512xf32>
    %150 = arith.addf %141, %149 : vector<8x512xf32>
    %151 = vector.extract_strided_slice %82 {offsets = [0, 8], sizes = [8, 1], strides = [1, 1]} : vector<8x9xf32> to vector<8x1xf32>
    %c495_i32_49 = arith.constant 495 : i32
    %152 = tpu.dynamic_rotate %81 by %c495_i32_49 dim 1 : vector<8x512xf32>, i32 -> vector<8x512xf32>
    %cst_50 = arith.constant 0.000000e+00 : f32
    %153 = vector.shape_cast %65 : vector<1x512xi1> to vector<1x512xi1>
    %154 = vector.broadcast %153 : vector<1x512xi1> to vector<8x512xi1>
    %155 = vector.broadcast %cst_50 : f32 to vector<8x512xf32>
    %156 = arith.select %154, %152, %155 : vector<8x512xi1>, vector<8x512xf32>
    %157 = vector.broadcast %151 : vector<8x1xf32> to vector<8x512xf32>
    %158 = arith.mulf %157, %156 : vector<8x512xf32>
    %159 = arith.addf %150, %158 : vector<8x512xf32>
    %c0_51 = arith.constant 0 : index
    %c0_52 = arith.constant 0 : index
    %160 = vector.load %arg5[%c0_51, %c0_52] : memref<8x1xf32, #tpu.memory_space<vmem>>, vector<8x1xf32>
    %161 = vector.broadcast %160 : vector<8x1xf32> to vector<8x512xf32>
    %162 = arith.addf %159, %161 : vector<8x512xf32>
    %163 = arith.negf %162 : vector<8x512xf32>
    %164 = math.exp %163 : vector<8x512xf32>
    %cst_53 = arith.constant 1.000000e+00 : f32
    %165 = vector.broadcast %cst_53 : f32 to vector<8x512xf32>
    %166 = arith.addf %165, %164 : vector<8x512xf32>
    %167 = arith.divf %165, %166 : vector<8x512xf32>
    %168 = arith.mulf %162, %167 : vector<8x512xf32>
    %c0_54 = arith.constant 0 : index
    %c0_55 = arith.constant 0 : index
    %169 = vector.load %arg6[%c0_54, %c0_55] : memref<8x1xf32, #tpu.memory_space<vmem>>, vector<8x1xf32>
    %c0_56 = arith.constant 0 : index
    %c0_57 = arith.constant 0 : index
    %170 = vector.load %arg7[%c0_56, %c0_57] : memref<1x1xf32, #tpu.memory_space<vmem>>, vector<1x1xf32>
    %c0_58 = arith.constant 0 : index
    %c0_59 = arith.constant 0 : index
    %171 = vector.load %arg8[%c0_58, %c0_59] : memref<8x1xf32, #tpu.memory_space<vmem>>, vector<8x1xf32>
    %c0_60 = arith.constant 0 : index
    %c0_61 = arith.constant 0 : index
    %172 = vector.load %arg9[%c0_60, %c0_61] : memref<8x1xf32, #tpu.memory_space<vmem>>, vector<8x1xf32>
    %173 = vector.extract_strided_slice %168 {offsets = [0, 0], sizes = [8, 256], strides = [1, 1]} : vector<8x512xf32> to vector<8x256xf32>
    %cst_62 = arith.constant dense<0.000000e+00> : vector<8xf32>
    %174 = vector.multi_reduction <add>, %173, %cst_62 [1] : vector<8x256xf32> to vector<8xf32>
    %175 = vector.shape_cast %174 : vector<8xf32> to vector<8x1xf32>
    %cst_63 = arith.constant 3.906250e-03 : f32
    %176 = vector.broadcast %cst_63 : f32 to vector<8x1xf32>
    %177 = arith.mulf %175, %176 : vector<8x1xf32>
    %178 = arith.mulf %169, %177 : vector<8x1xf32>
    %cst_64 = arith.constant dense<0.000000e+00> : vector<1xf32>
    %179 = vector.multi_reduction <add>, %178, %cst_64 [0] : vector<8x1xf32> to vector<1xf32>
    %180 = vector.shape_cast %179 : vector<1xf32> to vector<1x1xf32>
    %181 = arith.addf %180, %170 : vector<1x1xf32>
    %182 = arith.negf %181 : vector<1x1xf32>
    %183 = math.exp %182 : vector<1x1xf32>
    %cst_65 = arith.constant 1.000000e+00 : f32
    %184 = vector.broadcast %cst_65 : f32 to vector<1x1xf32>
    %185 = arith.addf %184, %183 : vector<1x1xf32>
    %186 = arith.divf %184, %185 : vector<1x1xf32>
    %187 = arith.mulf %181, %186 : vector<1x1xf32>
    %188 = vector.broadcast %187 : vector<1x1xf32> to vector<8x1xf32>
    %189 = arith.mulf %171, %188 : vector<8x1xf32>
    %cst_66 = arith.constant dense<0.000000e+00> : vector<8xf32>
    %190 = vector.multi_reduction <add>, %189, %cst_66 [1] : vector<8x1xf32> to vector<8xf32>
    %191 = vector.shape_cast %190 : vector<8xf32> to vector<8x1xf32>
    %192 = arith.addf %191, %172 : vector<8x1xf32>
    %193 = arith.negf %192 : vector<8x1xf32>
    %194 = math.exp %193 : vector<8x1xf32>
    %cst_67 = arith.constant 1.000000e+00 : f32
    %195 = vector.broadcast %cst_67 : f32 to vector<8x1xf32>
    %196 = arith.addf %195, %194 : vector<8x1xf32>
    %197 = arith.divf %195, %196 : vector<8x1xf32>
    %198 = vector.shape_cast %197 : vector<8x1xf32> to vector<8x1xf32>
    %199 = vector.broadcast %198 : vector<8x1xf32> to vector<8x256xf32>
    %200 = vector.extract_strided_slice %168 {offsets = [0, 256], sizes = [8, 256], strides = [1, 1]} : vector<8x512xf32> to vector<8x256xf32>
    %cst_68 = arith.constant dense<0.000000e+00> : vector<8xf32>
    %201 = vector.multi_reduction <add>, %200, %cst_68 [1] : vector<8x256xf32> to vector<8xf32>
    %202 = vector.shape_cast %201 : vector<8xf32> to vector<8x1xf32>
    %cst_69 = arith.constant 3.906250e-03 : f32
    %203 = vector.broadcast %cst_69 : f32 to vector<8x1xf32>
    %204 = arith.mulf %202, %203 : vector<8x1xf32>
    %205 = arith.mulf %169, %204 : vector<8x1xf32>
    %cst_70 = arith.constant dense<0.000000e+00> : vector<1xf32>
    %206 = vector.multi_reduction <add>, %205, %cst_70 [0] : vector<8x1xf32> to vector<1xf32>
    %207 = vector.shape_cast %206 : vector<1xf32> to vector<1x1xf32>
    %208 = arith.addf %207, %170 : vector<1x1xf32>
    %209 = arith.negf %208 : vector<1x1xf32>
    %210 = math.exp %209 : vector<1x1xf32>
    %cst_71 = arith.constant 1.000000e+00 : f32
    %211 = vector.broadcast %cst_71 : f32 to vector<1x1xf32>
    %212 = arith.addf %211, %210 : vector<1x1xf32>
    %213 = arith.divf %211, %212 : vector<1x1xf32>
    %214 = arith.mulf %208, %213 : vector<1x1xf32>
    %215 = vector.broadcast %214 : vector<1x1xf32> to vector<8x1xf32>
    %216 = arith.mulf %171, %215 : vector<8x1xf32>
    %cst_72 = arith.constant dense<0.000000e+00> : vector<8xf32>
    %217 = vector.multi_reduction <add>, %216, %cst_72 [1] : vector<8x1xf32> to vector<8xf32>
    %218 = vector.shape_cast %217 : vector<8xf32> to vector<8x1xf32>
    %219 = arith.addf %218, %172 : vector<8x1xf32>
    %220 = arith.negf %219 : vector<8x1xf32>
    %221 = math.exp %220 : vector<8x1xf32>
    %cst_73 = arith.constant 1.000000e+00 : f32
    %222 = vector.broadcast %cst_73 : f32 to vector<8x1xf32>
    %223 = arith.addf %222, %221 : vector<8x1xf32>
    %224 = arith.divf %222, %223 : vector<8x1xf32>
    %225 = vector.shape_cast %224 : vector<8x1xf32> to vector<8x1xf32>
    %226 = vector.broadcast %225 : vector<8x1xf32> to vector<8x256xf32>
    %227 = tpu.concatenate %199, %226 in 1 : vector<8x256xf32>, vector<8x256xf32> -> vector<8x512xf32>
    %228 = arith.mulf %168, %227 : vector<8x512xf32>
    %c0_74 = arith.constant 0 : index
    %c0_75 = arith.constant 0 : index
    %229 = vector.load %arg10[%c0_74, %c0_75] : memref<8x8xf32, #tpu.memory_space<vmem>>, vector<8x8xf32>
    %cst_76 = arith.constant dense<0.000000e+00> : vector<8x512xf32>
    %230 = tpu.matmul %229, %228, %cst_76 {dimension_numbers = #tpu.dot_dimension_numbers<[1], [0], [0], [1], [0, 0, 1, 1], [], []>} : vector<8x8xf32>, vector<8x512xf32>, vector<8x512xf32> -> vector<8x512xf32>
    %c0_77 = arith.constant 0 : index
    %c0_78 = arith.constant 0 : index
    %231 = vector.load %arg11[%c0_77, %c0_78] : memref<8x1xf32, #tpu.memory_space<vmem>>, vector<8x1xf32>
    %232 = vector.broadcast %231 : vector<8x1xf32> to vector<8x512xf32>
    %233 = arith.addf %230, %232 : vector<8x512xf32>
    %234 = arith.addf %233, %1 : vector<8x512xf32>
    %c0_79 = arith.constant 0 : index
    %c0_80 = arith.constant 0 : index
    %c0_81 = arith.constant 0 : index
    %235 = vector.load %arg12[%c0_79, %c0_80, %c0_81] : memref<1x8x512xf32, #tpu.memory_space<vmem>>, vector<1x8x512xf32>
    %236 = vector.shape_cast %235 : vector<1x8x512xf32> to vector<8x512xf32>
    %237 = vector.shape_cast %234 : vector<8x512xf32> to vector<1x8x512xf32>
    tpu.vector_store %arg12[%c0_79, %c0_80, %c0_81], %237 {strides = array<i32>} : memref<1x8x512xf32, #tpu.memory_space<vmem>>, vector<1x8x512xf32>,
    return
  }
  func.func @transform_0(%arg0: i32) -> (i32, i32, i32) {
    %c0_i32 = arith.constant 0 : i32
    %c0_i32_0 = arith.constant 0 : i32
    %c0_i32_1 = arith.constant 0 : i32
    return %arg0, %c0_i32, %c0_i32_0 : i32, i32, i32
  }
  func.func @transform_1(%arg0: i32) -> (i32, i32) {
    %c0_i32 = arith.constant 0 : i32
    %c0_i32_0 = arith.constant 0 : i32
    %c0_i32_1 = arith.constant 0 : i32
    return %c0_i32, %c0_i32_0 : i32, i32
  }
  func.func @transform_2(%arg0: i32) -> (i32, i32) {
    %c0_i32 = arith.constant 0 : i32
    %c0_i32_0 = arith.constant 0 : i32
    %c0_i32_1 = arith.constant 0 : i32
    return %c0_i32, %c0_i32_0 : i32, i32
  }
  func.func @transform_3(%arg0: i32) -> (i32, i32) {
    %c0_i32 = arith.constant 0 : i32
    %c0_i32_0 = arith.constant 0 : i32
    %c0_i32_1 = arith.constant 0 : i32
    return %c0_i32, %c0_i32_0 : i32, i32
  }
  func.func @transform_4(%arg0: i32) -> (i32, i32) {
    %c0_i32 = arith.constant 0 : i32
    %c0_i32_0 = arith.constant 0 : i32
    %c0_i32_1 = arith.constant 0 : i32
    return %c0_i32, %c0_i32_0 : i32, i32
  }
  func.func @transform_5(%arg0: i32) -> (i32, i32) {
    %c0_i32 = arith.constant 0 : i32
    %c0_i32_0 = arith.constant 0 : i32
    %c0_i32_1 = arith.constant 0 : i32
    return %c0_i32, %c0_i32_0 : i32, i32
  }
  func.func @transform_6(%arg0: i32) -> (i32, i32) {
    %c0_i32 = arith.constant 0 : i32
    %c0_i32_0 = arith.constant 0 : i32
    %c0_i32_1 = arith.constant 0 : i32
    return %c0_i32, %c0_i32_0 : i32, i32
  }
  func.func @transform_7(%arg0: i32) -> (i32, i32) {
    %c0_i32 = arith.constant 0 : i32
    %c0_i32_0 = arith.constant 0 : i32
    %c0_i32_1 = arith.constant 0 : i32
    return %c0_i32, %c0_i32_0 : i32, i32
  }
  func.func @transform_8(%arg0: i32) -> (i32, i32) {
    %c0_i32 = arith.constant 0 : i32
    %c0_i32_0 = arith.constant 0 : i32
    %c0_i32_1 = arith.constant 0 : i32
    return %c0_i32, %c0_i32_0 : i32, i32
  }
  func.func @transform_9(%arg0: i32) -> (i32, i32) {
    %c0_i32 = arith.constant 0 : i32
    %c0_i32_0 = arith.constant 0 : i32
    %c0_i32_1 = arith.constant 0 : i32
    return %c0_i32, %c0_i32_0 : i32, i32
  }
  func.func @transform_10(%arg0: i32) -> (i32, i32) {
    %c0_i32 = arith.constant 0 : i32
    %c0_i32_0 = arith.constant 0 : i32
    %c0_i32_1 = arith.constant 0 : i32
    return %c0_i32, %c0_i32_0 : i32, i32
  }
  func.func @transform_11(%arg0: i32) -> (i32, i32, i32) {
    %c0_i32 = arith.constant 0 : i32
    %c0_i32_0 = arith.constant 0 : i32
    %c0_i32_1 = arith.constant 0 : i32
    return %arg0, %c0_i32, %c0_i32_0 : i32, i32, i32
  }
}

</mosaic_0001>

<bundles_post_ra>
// kernel: tpu_custom_call.1
= control target key start
LH: loop header
LB: loop body
LE: loop exit
PB: predicated region body
PF: predicated region fallthrough
CT: control target
= control target key end

     0   :  { %s2204_s0 = inlined_call_operand.vmem [shape: f32[1,8,512], index: 0, kind: input, shape index: {}]   ;;  %s2205_s1 = inlined_call_operand.vmem [shape: f32[8,72], index: 1, kind: input, shape index: {}]   ;;  %s2206_s2 = inlined_call_operand.vmem [shape: f32[8,1], index: 2, kind: input, shape index: {}]   ;;  %s2207_s3 = inlined_call_operand.vmem [shape: f32[8,9], index: 3, kind: input, shape index: {}]   ;;  %s2208_s4 = inlined_call_operand.vmem [shape: f32[8,1], index: 4, kind: input, shape index: {}]   ;;  %s2209_s5 = inlined_call_operand.vmem [shape: f32[8,1], index: 5, kind: input, shape index: {}]   ;;  %s2210_s6 = inlined_call_operand.<no memory space> [shape: f32[1,1], index: 6, kind: input, shape index: {}]   ;;  %s2211_s7 = inlined_call_operand.vmem [shape: f32[8,1], index: 7, kind: input, shape index: {}]   ;;  %s2212_s8 = inlined_call_operand.vmem [shape: f32[8,1], index: 8, kind: input, shape index: {}]   ;;  %s2213_s9 = inlined_call_operand.vmem [shape: f32[8,8], index: 9, kind: input, shape index: {}]   ;;  %s2214_s10 = inlined_call_operand.vmem [shape: f32[8,1], index: 10, kind: input, shape index: {}]   ;;  %s2215_s11 = inlined_call_operand.hbm [shape: f32[1,8,512], index: 11, kind: output, shape index: {}]  }
   0x1   :  { %v16_v0 = vstv %s2210_s6 }
   0x2   :  { %17 = vst [vmem:[#allocation3] sm:$0x1] %v16_v0 }
   0x3   :  { %v1443_v1 = vld [vmem:[%s2204_s0] sm:$0xff]  ;;  %v1448_v2 = vld [vmem:[%s2204_s0 + $0x8] sm:$0xff]  ;;  %v1453_v3 = vld [vmem:[%s2204_s0 + $0x10] sm:$0xff] }
   0x4   :  { %v1209_v4 = vpack.i.bf16 %v1448_v2, %v1443_v1  ;;  %v1460_v5 = vld [vmem:[%s2204_s0 + $0x18] sm:$0xff] }
   0x5   :  { %18 = vsyncpa [#allocation5], 0  ;;  %s1357_s26 = smov 16   ;;  %s1358_s27 = smov 17   ;;  %v1214_v6 = vpack.i.bf16 %v1460_v5, %v1453_v3  ;;  %v1363_v7 = vmov 0.0   ;;  %v1364_v8 = vmov 0   ;;  %v2242_v14 = vlaneseq }
   0x6   :  { %1210 = vrot.lane.b32.xlu1 %v1209_v4, %s1357_s26  ;;  %1200 = vrot.lane.b32.xlu0 %v1209_v4, %s1358_s27  ;;  %s1359_s28 = smov 15   ;;  %s1360_s29 = smov 1   ;;  %v367_v9 = vld [vmem:[%s2206_s2] sm:$0xff]  ;;  %v1367_v11 = vmov 1   ;;  %v1368_v12 = vmov 3   ;;  %v1369_v13 = vmov 4  }
   0x7   :  { %s1361_s30 = smov 127   ;;  %s1362_s12 = smov 113   ;;  %441 = vmatprep.mubr.f32.mxu0 %v1363_v7  ;;  %512 = vmatprep.mubr.f32.mxu1 %v1363_v7  ;;  %v1496_v10 = vld [vmem:[%s2207_s3] sm:$0xff]  ;;  %v1503_v15 = vand.u32 127, %v2242_v14  ;;  %v2260_v56 = vmov 0 }
   0x8   :  { %1269 = vset.pattern.permute.xlu0 %v1364_v8  ;;  %1270 = vset.pattern.permute.xlu1 %v1364_v8  ;;  %s1365_s13 = smov 112   ;;  %s1366_s14 = smov 111  }
   0x9   :  { %v47_v16 = vadd.s32 128, %v1503_v15  ;;  %v49_v17 = vadd.s32 384, %v1503_v15  ;;  %v50_v19 = vand.u32 255, %v1503_v15  ;;  %v48_v21 = vadd.s32 256, %v1503_v15 }
   0xa   :  { %1215 = vrot.lane.b32.xlu1 %v1214_v6, %s1357_s26  ;;  %1205 = vrot.lane.b32.xlu0 %v1214_v6, %s1358_s27  ;;  %vm2223_vm6 = vcmp.lt.s32.totalorder %v1503_v15, 17  ;;  %vm2222_vm8 = vcmp.lt.s32.totalorder %v1503_v15, 16 }
   0xb   :  { %v51_v18 = vand.u32 255, %v47_v16  ;;  %v53_v20 = vand.u32 255, %v49_v17  ;;  %v1513_v24 = vand.u32 15, %v50_v19  ;;  %v1515_v25 = vshra.s32 %v50_v19, 4 }
   0xc   :  { %v52_v28 = vand.u32 255, %v48_v21  ;;  %v2267_v17 = vmov 0 }
   0xd   :  { %v1509_v22 = vand.u32 15, %v51_v18  ;;  %v1511_v23 = vshra.s32 %v51_v18, 4  ;;  %v1517_v26 = vand.u32 15, %v53_v20  ;;  %v1519_v27 = vshra.s32 %v53_v20, 4 }
   0xe   :  { %1225 = vrot.lane.b32.xlu1 %v1214_v6, %s1359_s28  ;;  %1220 = vrot.lane.b32.xlu0 %v1209_v4, %s1359_s28  ;;  %vm2218_vm2 = vcmp.ge.s32.totalorder %v1515_v25, 1  ;;  %vm2216_vm3 = vcmp.ge.s32.totalorder %v1513_v24, 1  ;;  %v1527_v29 = vand.u32 15, %v52_v28  ;;  %v1529_v30 = vshra.s32 %v52_v28, 4 }
   0xf   :  { %vm2220_vm0 = vcmp.ge.s32.totalorder %v1511_v23, 1  ;;  %vm2225_vm1 = vcmp.ge.s32.totalorder %v1509_v22, 1  ;;  %vm2226_vm4 = vcmp.ge.s32.totalorder %v1519_v27, 1  ;;  %vm2217_vm5 = vcmp.ge.s32.totalorder %v1517_v26, 1  ;;  %vm1545_vm9 = vmand %vm2218_vm2, %vm2216_vm3 }
  0x10   :  { %vm1536_vm7 = vmand %vm2220_vm0, %vm2225_vm1  ;;  %vm2224_vm12 = vcmp.ge.s32.totalorder %v1529_v30, 1  ;;  %vm2219_vm13 = vcmp.ge.s32.totalorder %v1527_v29, 1  ;;  %vm2221_vm15 = vcmp.lt.s32.totalorder %v1509_v22, 15  ;;  %v2270_v28 = vmov 0 }
  0x11   :  { %vm1553_vm10 = vmand %vm2226_vm4, %vm2217_vm5 }
  0x12   :  { %1235 = vrot.lane.b32.xlu1 %v1214_v6, %s1360_s29  ;;  %1230 = vrot.lane.b32.xlu0 %v1209_v4, %s1360_s29  ;;  %vm1132_vm11 = vmpackc.low %vm2220_vm0, %vm1536_vm7 }
  0x13   :  { %vm1571_vm14 = vmpackc.low %vm2218_vm2, %vm1545_vm9  ;;  %vm2227_vm2 = vcmp.lt.s32.totalorder %v1517_v26, 15 }
  0x14   :  { %vm1580_vm3 = vmpackc.low %vm2226_vm4, %vm1553_vm10 }
  0x15   :  { %vm1588_vm5 = vmand %vm2224_vm12, %vm2219_vm13 }
  0x16   :  { %1245 = vrot.lane.b32.xlu1 %v1214_v6, %s1361_s30  ;;  %1240 = vrot.lane.b32.xlu0 %v1209_v4, %s1361_s30  ;;  %vm1159_vm13 = vmpackc.low %vm2224_vm12, %vm1588_vm5 }
  0x17   :  { %vm1636_vm12 = vmand %vm2226_vm4, %vm2227_vm2 }
  0x1a   :  { %1255 = vrot.lane.b32.xlu1 %v1214_v6, %s1362_s12  ;;  %1250 = vrot.lane.b32.xlu0 %v1209_v4, %s1362_s12 }
  0x1e   :  { %1265 = vrot.lane.b32.xlu1 %v1214_v6, %s1365_s13  ;;  %1260 = vrot.lane.b32.xlu0 %v1209_v4, %s1365_s13 }
  0x22   :  { %300 = vrot.lane.b32.xlu1 %v1448_v2, %s1366_s14  ;;  %298 = vrot.lane.b32.xlu0 %v1443_v1, %s1366_s14 }
  0x26   :  { %304 = vrot.lane.b32.xlu1 %v1460_v5, %s1366_s14  ;;  %302 = vrot.lane.b32.xlu0 %v1453_v3, %s1366_s14 }
  0x2a   :  { %370 = vperm.xlu0 %1269, %v367_v9   ;;  %566 = vperm.xlu1 %1270, %v1496_v10  }
  0x2e   :  { %1271 = vset.pattern.permute.xlu1 %v1367_v11 }
  0x2f   :  { %594 = vperm.xlu1 %1271, %v1496_v10  }
  0x33   :  { %1273 = vset.pattern.permute.xlu1 %v1368_v12  ;;  %v2264_v12 = vmov 0 }
  0x34   :  { %650 = vperm.xlu1 %1273, %v1496_v10   ;;  %v2265_v12 = vsel %vm1636_vm12, 4294967295, %v2264_v12 }
  0x38   :  { %1274 = vset.pattern.permute.xlu1 %v1369_v13 }
  0x39   :  { %662 = vperm.xlu1 %1274, %v1496_v10  }
  0x78   :  { %v1211_v31 = vpop.permute.xlu1 %1210  ;;  %v1201_v32 = vpop.permute.xlu0 %1200 }
  0x79   :  { %v1213_v34 = vunpack.i.h.bf16 %v1211_v31  ;;  %v1212_v35 = vunpack.i.l.bf16 %v1211_v31  ;;  %v1203_v36 = vunpack.i.h.bf16 %v1201_v32  ;;  %v1202_v37 = vunpack.i.l.bf16 %v1201_v32 }
  0x7b   :  { %v74_v40 = vsel %vm2223_vm6, %v1202_v37, %v1203_v36  ;;  %v115_v41 = vsel %vm2222_vm8, %v1212_v35, %v1213_v34 }
  0x7c   :  { %v1216_v42 = vpop.permute.xlu1 %1215  ;;  %v1206_v43 = vpop.permute.xlu0 %1205  ;;  %v1131_v44 = vpack.c.bf16 %v115_v41, %v74_v40 }
  0x7d   :  { %v1218_v46 = vunpack.i.h.bf16 %v1216_v42  ;;  %v1217_v47 = vunpack.i.l.bf16 %v1216_v42  ;;  %v1208_v48 = vunpack.i.h.bf16 %v1206_v43  ;;  %v1207_v49 = vunpack.i.l.bf16 %v1206_v43 }
  0x7e   :  { %1133 = vmatprep.subr.msk.bf16.mxu0 %vm1132_vm11, %v1131_v44  ;;  %vm1605_vm11 = vmand %vm2220_vm0, %vm2221_vm15  ;;  %vm2228_vm0 = vcmp.lt.s32.totalorder %v1513_v24, 15  ;;  %vm2229_vm15 = vcmp.lt.s32.totalorder %v1527_v29, 15 }
  0x7f   :  { %v75_v52 = vsel %vm2223_vm6, %v1208_v48, %v1202_v37  ;;  %v116_v53 = vsel %vm2222_vm8, %v1218_v46, %v1212_v35  ;;  %v72_v54 = vsel %vm2223_vm6, %v1207_v49, %v1208_v48  ;;  %v113_v55 = vsel %vm2222_vm8, %v1217_v47, %v1218_v46 }
  0x80   :  { %v2261_v56 = vsel %vm1605_vm11, 4294967295, %v2260_v56  ;;  %v1226_v57 = vpop.permute.xlu1 %1225  ;;  %v1221_v58 = vpop.permute.xlu0 %1220  ;;  %v1134_v59 = vpack.c.bf16 %v116_v53, %v75_v52  ;;  %v1155_v60 = vpack.c.bf16 %v113_v55, %v72_v54  ;;  %v73_v61 = vsel %vm2223_vm6, %v1203_v36, %v1207_v49 }
  0x81   :  { %v114_v62 = vsel %vm2222_vm8, %v1213_v34, %v1217_v47  ;;  %v1228_v63 = vunpack.i.h.bf16 %v1226_v57  ;;  %v1227_v0 = vunpack.i.l.bf16 %v1226_v57  ;;  %v1223_v4 = vunpack.i.h.bf16 %v1221_v58  ;;  %vm1627_vm8 = vmpackc.low %vm2225_vm1, %vm1605_vm11 }
  0x82   :  { %v1222_v6 = vunpack.i.l.bf16 %v1221_v58  ;;  %1136 = vmatpush1.bf16.msk.msra.mxu0 %vm1571_vm14, %v1134_v59  ;;  %1157 = vmatprep.subr.msk.bf16.mxu1 %vm1580_vm3, %v1155_v60  ;;  %v1158_v9 = vpack.c.bf16 %v114_v62, %v73_v61  ;;  %vm2266_vm1 = vcmp.ge.s32.totalorder %v1515_v25, 1  ;;  %vm2272_vm14 = vcmp.lt.s32.totalorder %v1503_v15, 15 }
  0x83   :  { %vm1646_vm6 = vmand %vm2266_vm1, %vm2228_vm0  ;;  %v142_v31 = vsel %vm2272_vm14, %v1227_v0, %v1228_v63  ;;  %vm2276_vm3 = vcmp.ge.s32.totalorder %v1517_v26, 1  ;;  %v2319_v36 = vmov 0  ;;  %v2334_v57 = vmov 0 }
  0x84   :  { %1160 = vmatpush1.bf16.msk.msra.mxu1 %vm1159_vm13, %v1158_v9  ;;  %v1236_v13 = vpop.permute.xlu1 %1235  ;;  %v1231_v16 = vpop.permute.xlu0 %1230  ;;  %v2268_v17 = vsel %vm1646_vm6, 4294967295, %v2267_v17  ;;  %vm2269_vm13 = vcmp.ge.s32.totalorder %v1529_v30, 1  ;;  %vm2273_vm1 = vmmov %vm2272_vm14 }
  0x85   :  { %v1238_v18 = vunpack.i.h.bf16 %v1236_v13  ;;  %v1237_v19 = vunpack.i.l.bf16 %v1236_v13  ;;  %v1233_v20 = vunpack.i.h.bf16 %v1231_v16  ;;  %v1232_v21 = vunpack.i.l.bf16 %v1231_v16  ;;  %vm1655_vm2 = vmand %vm2269_vm13, %vm2229_vm15 }
  0x86   :  { %v2271_v28 = vsel %vm1655_vm2, 4294967295, %v2270_v28  ;;  %v143_v32 = vsel %vm2273_vm1, %v1223_v4, %v1227_v0  ;;  %vm2274_vm0 = vmmov %vm2273_vm1  ;;  %vm2279_vm15 = vcmp.lt.s32.totalorder %v1503_v15, 1 }
  0x87   :  { %v144_v34 = vsel %vm2274_vm0, %v1222_v6, %v1223_v4  ;;  %vm2275_vm4 = vmmov %vm2274_vm0  ;;  %v179_v37 = vsel %vm2279_vm15, %v1237_v19, %v1238_v18 }
  0x88   :  { %v145_v35 = vsel %vm2275_vm4, %v1228_v63, %v1222_v6  ;;  %vm1671_vm13 = vmpackc.low %vm2276_vm3, %vm1636_vm12  ;;  %vm2283_vm4 = vcmp.ge.s32.totalorder %v1513_v24, 1  ;;  %v1161_v44 = vpack.c.bf16 %v179_v37, %v142_v31  ;;  %v1246_v48 = vpop.permute.xlu1 %1245  ;;  %v1241_v49 = vpop.permute.xlu0 %1240  ;;  %v2301_v63 = vmov 0 }
  0x89   :  { %vm2280_vm14 = vmmov %vm2279_vm15  ;;  %vm2286_vm15 = vcmp.ge.s32.totalorder %v1527_v29, 1  ;;  %v1248_v52 = vunpack.i.h.bf16 %v1246_v48  ;;  %v1247_v53 = vunpack.i.l.bf16 %v1246_v48  ;;  %v1243_v54 = vunpack.i.h.bf16 %v1241_v49 }
  0x8a   :  { %v180_v40 = vsel %vm2280_vm14, %v1233_v20, %v1237_v19  ;;  %vm2281_vm1 = vmmov %vm2280_vm14  ;;  %v1242_v55 = vunpack.i.l.bf16 %v1241_v49  ;;  %1163 = vmatprep.subr.msk.bf16.mxu1 %vm1671_vm13, %v1161_v44 }
  0x8b   :  { %v181_v41 = vsel %vm2281_vm1, %v1232_v21, %v1233_v20  ;;  %vm2282_vm0 = vmmov %vm2281_vm1  ;;  %v1164_v47 = vpack.c.bf16 %v180_v40, %v143_v32  ;;  %vm2233_vm1 = vmmov 1  }
  0x8c   :  { %v182_v42 = vsel %vm2282_vm0, %v1238_v18, %v1232_v21  ;;  %vm1687_vm3 = vmpackc.low %vm2283_vm4, %vm1646_vm6  ;;  %v1137_v45 = vpack.c.bf16 %v181_v41, %v144_v34  ;;  %vm2289_vm0 = vcmp.lt.s32.totalorder %v1509_v22, 15  ;;  %v1256_v11 = vpop.permute.xlu1 %1255  ;;  %v1251_v13 = vpop.permute.xlu0 %1250  ;;  %v2311_v18 = vmov 0 }
  0x8d   :  { %v1140_v46 = vpack.c.bf16 %v182_v42, %v145_v35  ;;  %vm1695_vm14 = vmpackc.low %vm2286_vm15, %vm1655_vm2  ;;  %vm2292_vm15 = vcmp.lt.s32.totalorder %v1517_v26, 15  ;;  %v2315_v21 = vmov 0 }
  0x8e   :  { %vm1702_vm4 = vmpackc.low %vm2289_vm0, %vm2233_vm1  ;;  %1139 = vmatprep.subr.msk.bf16.mxu0 %vm1627_vm8, %v1137_v45  ;;  %vm2295_vm0 = vcmp.lt.s32.totalorder %v1503_v15, 127  ;;  %1166 = vmatpush1.bf16.msk.msra.mxu1 %vm1695_vm14, %v1164_v47  ;;  %vm2306_vm14 = vcmp.lt.s32.totalorder %v1511_v23, 15 }
  0x8f   :  { %vm1713_vm2 = vmpackc.low %vm2292_vm15, %vm2233_vm1  ;;  %v212_v59 = vsel %vm2295_vm0, %v1247_v53, %v1248_v52  ;;  %1142 = vmatpush1.bf16.msk.msra.mxu0 %vm1687_vm3, %v1140_v46  ;;  %vm2299_vm15 = vcmp.ge.s32.totalorder %v1509_v22, 1  ;;  %vm2300_vm1 = vcmp.lt.s32.totalorder %v1511_v23, 15  ;;  %vm2304_vm3 = vcmp.lt.s32.totalorder %v1513_v24, 15 }
  0x90   :  { %vm2296_vm11 = vmmov %vm2295_vm0  ;;  %v1170_v0 = vpack.c.bf16 %v212_v59, %v1453_v3  ;;  %v1253_v3 = vunpack.i.h.bf16 %v1251_v13  ;;  %v1266_v19 = vpop.permute.xlu1 %1265  ;;  %v1261_v20 = vpop.permute.xlu0 %1260 }
  0x91   :  { %v213_v60 = vsel %vm2296_vm11, %v1243_v54, %v1247_v53  ;;  %vm2297_vm8 = vmmov %vm2295_vm0  ;;  %vm2303_vm11 = vmmov 1   ;;  %v1268_v31 = vunpack.i.h.bf16 %v1266_v19  ;;  %v1267_v32 = vunpack.i.l.bf16 %v1266_v19 }
  0x92   :  { %v214_v61 = vsel %vm2297_vm8, %v1242_v55, %v1243_v54  ;;  %vm2298_vm13 = vmmov %vm2295_vm0  ;;  %v1143_v4 = vpack.c.bf16 %v213_v60, %v1448_v2  ;;  %vm2305_vm0 = vcmp.lt.s32.totalorder %v1527_v29, 15  ;;  %v1257_v2 = vunpack.i.l.bf16 %v1256_v11 }
  0x93   :  { %v215_v62 = vsel %vm2298_vm13, %v1248_v52, %v1242_v55  ;;  %vm1732_vm12 = vmand %vm2300_vm1, %vm2299_vm15  ;;  %v1146_v6 = vpack.c.bf16 %v214_v61, %v1443_v1  ;;  %v1258_v1 = vunpack.i.h.bf16 %v1256_v11  ;;  %vm2310_vm15 = vcmp.lt.s32.totalorder %v1519_v27, 15 }
  0x94   :  { %v2302_v63 = vsel %vm1732_vm12, 4294967295, %v2301_v63  ;;  %v1167_v9 = vpack.c.bf16 %v215_v62, %v1460_v5  ;;  %vm1147_vm1 = vmpackc.low %vm2304_vm3, %vm2303_vm11  ;;  %v1252_v5 = vunpack.i.l.bf16 %v1251_v13  ;;  %1145 = vmatprep.subr.msk.bf16.mxu0 %vm1702_vm4, %v1143_v4  ;;  %vm2313_vm4 = vcmp.ge.s32.totalorder %v1513_v24, 1  ;;  %v301_v52 = vpop.permute.xlu1 %300  ;;  %v299_v53 = vpop.permute.xlu0 %298  ;;  %v62_v4 = vld [vmem:[%s2205_s1] sm:$0xff] }
  0x95   :  { %vm1171_vm8 = vmpackc.low %vm2305_vm0, %vm2303_vm11  ;;  %vm2236_vm11 = vcmp.lt.s32.totalorder %v1503_v15, 113  ;;  %1148 = vmatpush1.bf16.msk.msra.mxu0 %vm1147_vm1, %v1146_v6  ;;  %vm2309_vm0 = vcmp.ge.s32.totalorder %v1517_v26, 1  ;;  %v1263_v34 = vunpack.i.h.bf16 %v1261_v20  ;;  %v1262_v35 = vunpack.i.l.bf16 %v1261_v20 }
  0x96   :  { %1169 = vmatprep.subr.msk.bf16.mxu1 %vm1713_vm2, %v1167_v9  ;;  %vm1758_vm3 = vmpackc.low %vm2306_vm14, %vm1732_vm12  ;;  %vm2237_vm2 = vcmp.lt.s32.totalorder %v1503_v15, 112  ;;  %vm2314_vm14 = vcmp.lt.s32.totalorder %v1515_v25, 15  ;;  %vm2317_vm1 = vcmp.ge.s32.totalorder %v1527_v29, 1  ;;  %v241_v37 = vsel %vm2236_vm11, %v1257_v2, %v1258_v1 }
  0x97   :  { %vm1767_vm13 = vmand %vm2310_vm15, %vm2309_vm0  ;;  %1172 = vmatpush1.bf16.msk.msra.mxu1 %vm1171_vm8, %v1170_v0  ;;  %vm2318_vm8 = vcmp.lt.s32.totalorder %v1529_v30, 15  ;;  %v242_v40 = vsel %vm2236_vm11, %v1253_v3, %v1257_v2  ;;  %v243_v41 = vsel %vm2236_vm11, %v1252_v5, %v1253_v3  ;;  %v244_v42 = vsel %vm2236_vm11, %v1258_v1, %v1252_v5 }
  0x98   :  { %v2312_v18 = vsel %vm1767_vm13, 4294967295, %v2311_v18  ;;  %vm1776_vm12 = vmand %vm2314_vm14, %vm2313_vm4  ;;  %vm2321_vm0 = vcmp.lt.s32.totalorder %v1519_v27, 15  ;;  %v278_v43 = vsel %vm2237_vm2, %v1267_v32, %v1268_v31  ;;  %v279_v44 = vsel %vm2237_vm2, %v1263_v34, %v1267_v32  ;;  %v305_v58 = vpop.permute.xlu1 %304  ;;  %v303_v59 = vpop.permute.xlu0 %302 }
  0x99   :  { %v2316_v21 = vsel %vm1776_vm12, 4294967295, %v2315_v21  ;;  %vm1784_vm15 = vmand %vm2318_vm8, %vm2317_vm1  ;;  %v280_v45 = vsel %vm2237_vm2, %v1262_v35, %v1263_v34  ;;  %v281_v46 = vsel %vm2237_vm2, %v1268_v31, %v1262_v35  ;;  %v1176_v47 = vpack.c.bf16 %v278_v43, %v241_v37 }
  0x9a   :  { %v2320_v36 = vsel %vm1784_vm15, 4294967295, %v2319_v36  ;;  %vm1174_vm4 = vmpackc.low %vm2321_vm0, %vm1767_vm13  ;;  %v1149_v48 = vpack.c.bf16 %v279_v44, %v242_v40  ;;  %v1152_v49 = vpack.c.bf16 %v280_v45, %v243_v41  ;;  %v1173_v50 = vpack.c.bf16 %v281_v46, %v244_v42 }
  0x9b   :  { %vm1153_vm1 = vmpackc.low %vm2314_vm14, %vm1776_vm12  ;;  %vm2322_vm11 = vcmp.lt.s32.totalorder %v1509_v22, 15  ;;  %vm2323_vm2 = vcmp.lt.s32.totalorder %v1511_v23, 15  ;;  %v2324_v54 = vmov 0  ;;  %vm2327_vm14 = vcmp.lt.s32.totalorder %v1517_v26, 15 }
  0x9c   :  { %vm1177_vm0 = vmpackc.low %vm2318_vm8, %vm1784_vm15  ;;  %1151 = vmatprep.subr.msk.bf16.mxu0 %vm1758_vm3, %v1149_v48  ;;  %1175 = vmatprep.subr.msk.bf16.mxu1 %vm1174_vm4, %v1173_v50  ;;  %vm2328_vm12 = vcmp.lt.s32.totalorder %v1519_v27, 15  ;;  %v2329_v55 = vmov 0  ;;  %vm306_vm8 = vcmp.lt.s32.totalorder %v1503_v15, 111  ;;  %vm2337_vm3 = vcmp.lt.s32.totalorder %v1527_v29, 15 }
  0x9d   :  { %vm1820_vm13 = vmand %vm2323_vm2, %vm2322_vm11  ;;  %1154 = vmatpush1.bf16.msk.msra.mxu0 %vm1153_vm1, %v1152_v49  ;;  %1178 = vmatpush1.bf16.msk.msra.mxu1 %vm1177_vm0, %v1176_v47  ;;  %vm2332_vm11 = vcmp.lt.s32.totalorder %v1513_v24, 15  ;;  %vm2333_vm2 = vcmp.lt.s32.totalorder %v1515_v25, 15  ;;  %v2339_v60 = vmov 0  ;;  %v310_v61 = vsel %vm306_vm8, %v305_v58, %v299_v53 }
  0x9e   :  { %v2325_v54 = vsel %vm1820_vm13, 4294967295, %v2324_v54  ;;  %vm1830_vm6 = vmand %vm2328_vm12, %vm2327_vm14  ;;  %vm2338_vm12 = vcmp.lt.s32.totalorder %v1529_v30, 15  ;;  %v307_v62 = vsel %vm306_vm8, %v303_v59, %v305_v58  ;;  %v308_v0 = vsel %vm306_vm8, %v301_v52, %v303_v59 }
  0x9f   :  { %2326 = vst [vmem:[#allocation7_spill] sm:$0xff] %v2325_v54  ;;  %v2330_v55 = vsel %vm1830_vm6, 4294967295, %v2329_v55  ;;  %vm1839_vm15 = vmand %vm2333_vm2, %vm2332_vm11  ;;  %vm373_vm1 = vcmask 588800   ;;  %v309_v6 = vsel %vm306_vm8, %v299_v53, %v301_v52  ;;  %1113 = vmatprep.subr.msk.mxu0 %vm1820_vm13, %v308_v0  ;;  %1129 = vmatprep.subr.msk.mxu1 %vm1830_vm6, %v310_v61  ;;  %v1371_v9 = vmov 2  }
  0xa0   :  { %2331 = vst [vmem:[#allocation8_spill] sm:$0xff] %v2330_v55  ;;  %v2335_v57 = vsel %vm1839_vm15, 4294967295, %v2334_v57  ;;  %vm1847_vm4 = vmand %vm2338_vm12, %vm2337_vm3  ;;  %1272 = vset.pattern.permute.xlu0 %v1371_v9  ;;  %v1372_v11 = vmov 7   ;;  %v1373_v13 = vmov 5   ;;  %v1374_v1 = vmov 8  }
  0xa1   :  { %2336 = vst [vmem:[#allocation9_spill] sm:$0xff] %v2335_v57  ;;  %v2340_v60 = vsel %vm1847_vm4, 4294967295, %v2339_v60  ;;  %1114 = vmatpush1.msk.msra.mxu0 %vm1839_vm15, %v309_v6  ;;  %1130 = vmatpush1.msk.msra.mxu1 %vm1847_vm4, %v307_v62  ;;  %v1375_v2 = vmov 6   ;;  %vm2343_vm0 = vcmp.lt.s32.totalorder %v1503_v15, 17  ;;  %vm2344_vm14 = vcmp.lt.s32.totalorder %v1503_v15, 16 }
  0xa2   :  { %2341 = vst [vmem:[#allocation10_spill] sm:$0xff] %v2340_v60  ;;  %1083 = vmatmul.mubr.msk.f32.vlgmr.msra.gmra.mrb[0].mxu0 %vm373_vm1, %v62_v4  ;;  %1084 = vmatmul.mubr.msk.f32.vlgmr.msra.gmra.mrb[0].mxu1 %vm373_vm1, %v62_v4  ;;  %vm2345_vm11 = vmmov %vm2343_vm0  ;;  %vm2349_vm1 = vcmp.lt.s32.totalorder %v1503_v15, 15 }
  0xa3   :  { %983 = vmatprep.mubr.f32.mxu0 %v1363_v7  ;;  %1054 = vmatprep.mubr.f32.mxu1 %v1363_v7  ;;  %vm2346_vm2 = vmmov %vm2343_vm0 }
  0xa4   :  { %622 = vperm.xlu0 %1272, %v1496_v10   ;;  %1277 = vset.pattern.permute.xlu1 %v1372_v11  ;;  %vm2347_vm3 = vmmov %vm2343_vm0 }
  0xa5   :  { %746 = vperm.xlu1 %1277, %v1496_v10   ;;  %vm2348_vm12 = vmmov %vm2344_vm14 }
  0xa8   :  { %1275 = vset.pattern.permute.xlu0 %v1373_v13 }
  0xa9   :  { %690 = vperm.xlu0 %1275, %v1496_v10   ;;  %1278 = vset.pattern.permute.xlu1 %v1374_v1  ;;  %v371_v7 = vpop.permute.xlu0 %370  ;;  %v1879_v40 = vpop.permute.xlu1 %566  ;;  %v785_v1 = vld [vmem:[%s2208_s4] sm:$0xff] }
  0xaa   :  { %774 = vperm.xlu1 %1278, %v1496_v10  }
  0xad   :  { %1276 = vset.pattern.permute.xlu0 %v1375_v2 }
  0xae   :  { %718 = vperm.xlu0 %1276, %v1496_v10   ;;  %1280 = vset.pattern.permute.xlu1 %v1364_v8 }
  0xb2   :  { %1279 = vset.pattern.permute.xlu0 %v1364_v8  ;;  %v1881_v8 = vpop.permute.xlu1 %594 }
  0xb6   :  { %v1883_v46 = vpop.permute.xlu1 %650 }
  0xba   :  { %v1885_v50 = vpop.permute.xlu1 %662 }
 0x123   :  { %v1941_v2 = vpop.permute.xlu0 %622 }
 0x175   :  { %v443_v3 = vpop.f32.mrb[0].mxu0  ;;  %v514_v5 = vpop.f32.mrb[0].mxu1 }
 0x176   :  { %v444_v16 = vadd.f32 %v443_v3, %v371_v7  ;;  %v515_v19 = vadd.f32 %v514_v5, %v371_v7  ;;  %v445_v20 = vpop.f32.mrb[1].mxu0  ;;  %v516_v31 = vpop.f32.mrb[1].mxu1 }
 0x177   :  { %v446_v32 = vadd.f32 %v445_v20, %v371_v7  ;;  %v517_v47 = vadd.f32 %v516_v31, %v371_v7  ;;  %v1943_v7 = vpop.permute.xlu1 %746  ;;  %v1945_v3 = vpop.permute.xlu0 %690 }
 0x178   :  { %v1085_v34 = vmul.f32 -1.442695, %v444_v16  ;;  %v1087_v35 = vmul.f32 -1.442695, %v515_v19 }
 0x179   :  { %v1086_v37 = vmul.f32 -1.442695, %v446_v32  ;;  %v1088_v48 = vmul.f32 -1.442695, %v517_v47 }
 0x17a   :  { %1281 = vpow2.f32 %v1085_v34 }
 0x17b   :  { %1283 = vpow2.f32 %v1087_v35  ;;  %v1947_v5 = vpop.permute.xlu1 %774 }
 0x17c   :  { %1285 = vpow2.f32 %v1086_v37  ;;  %2342 = vst [vmem:[#allocation11_spill] sm:$0xff] %v1947_v5 }
 0x184   :  { %v1282_v10 = vpop.eup %1281 }
 0x185   :  { %v1284_v41 = vpop.eup %1283  ;;  %v531_v42 = vadd.f32 1.0, %v1282_v10 }
 0x186   :  { %v1286_v43 = vpop.eup %1285  ;;  %v533_v44 = vadd.f32 1.0, %v1284_v41 }
 0x187   :  { %1287 = vrcp.f32 %v531_v42  ;;  %v532_v45 = vadd.f32 1.0, %v1286_v43 }
 0x188   :  { %1289 = vrcp.f32 %v533_v44 }
 0x189   :  { %1291 = vrcp.f32 %v532_v45 }
 0x18a   :  { %1293 = vpow2.f32 %v1088_v48 }
 0x191   :  { %v1288_v49 = vpop.eup %1287 }
 0x192   :  { %v1290_v52 = vpop.eup %1289  ;;  %v543_v53 = vmul.f32 %v1288_v49, %v444_v16  ;;  %v1949_v16 = vpop.permute.xlu0 %718 }
 0x193   :  { %v1292_v58 = vpop.eup %1291  ;;  %v545_v59 = vmul.f32 %v1290_v52, %v515_v19 }
 0x194   :  { %v544_v61 = vmul.f32 %v1292_v58, %v446_v32  ;;  %v1888_v62 = vmul.f32 %v1885_v50, %v543_v53  ;;  %605 = vrot.lane.b32.xlu0 %v543_v53, %s1359_s28  ;;  %548 = vrot.lane.b32.xlu1 %v543_v53, %s1358_s27  ;;  %v1294_v6 = vpop.eup %1293 }
 0x195   :  { %v1893_v0 = vmul.f32 %v1885_v50, %v545_v59  ;;  %v534_v9 = vadd.f32 1.0, %v1294_v6 }
 0x196   :  { %v1896_v4 = vmul.f32 %v1885_v50, %v544_v61 }
 0x197   :  { %1295 = vrcp.f32 %v534_v9 }
 0x198   :  { %609 = vrot.lane.b32.xlu0 %v545_v59, %s1359_s28  ;;  %552 = vrot.lane.b32.xlu1 %v545_v59, %s1358_s27 }
 0x19c   :  { %637 = vrot.lane.b32.xlu0 %v545_v59, %s1360_s29  ;;  %577 = vrot.lane.b32.xlu1 %v543_v53, %s1357_s26 }
 0x1a0   :  { %701 = vrot.lane.b32.xlu0 %v543_v53, %s1362_s12  ;;  %581 = vrot.lane.b32.xlu1 %v545_v59, %s1357_s26 }
 0x1a1   :  { %v1296_v11 = vpop.eup %1295 }
 0x1a2   :  { %v1912_v13 = vmul.f32 %v1296_v11, %v517_v47 }
 0x1a4   :  { %705 = vrot.lane.b32.xlu0 %v545_v59, %s1362_s12  ;;  %633 = vrot.lane.b32.xlu1 %v543_v53, %s1360_s29 }
 0x1a8   :  { %729 = vrot.lane.b32.xlu0 %v543_v53, %s1365_s13  ;;  %673 = vrot.lane.b32.xlu1 %v543_v53, %s1361_s30 }
 0x1ac   :  { %733 = vrot.lane.b32.xlu0 %v545_v59, %s1365_s13  ;;  %677 = vrot.lane.b32.xlu1 %v545_v59, %s1361_s30 }
 0x1b0   :  { %550 = vrot.lane.b32.xlu0 %v544_v61, %s1358_s27  ;;  %607 = vrot.lane.b32.xlu1 %v544_v61, %s1359_s28 }
 0x1b4   :  { %554 = vrot.lane.b32.xlu0 %v1912_v13, %s1358_s27  ;;  %611 = vrot.lane.b32.xlu1 %v1912_v13, %s1359_s28 }
 0x1b8   :  { %579 = vrot.lane.b32.xlu0 %v544_v61, %s1357_s26  ;;  %635 = vrot.lane.b32.xlu1 %v544_v61, %s1360_s29 }
 0x1bc   :  { %583 = vrot.lane.b32.xlu0 %v1912_v13, %s1357_s26  ;;  %639 = vrot.lane.b32.xlu1 %v1912_v13, %s1360_s29 }
 0x1c0   :  { %675 = vrot.lane.b32.xlu0 %v544_v61, %s1361_s30  ;;  %757 = vrot.lane.b32.xlu1 %v543_v53, %s1366_s14 }
 0x1c4   :  { %679 = vrot.lane.b32.xlu0 %v1912_v13, %s1361_s30  ;;  %703 = vrot.lane.b32.xlu1 %v544_v61, %s1362_s12 }
 0x1c8   :  { %788 = vperm.xlu0 %1279, %v785_v1   ;;  %707 = vrot.lane.b32.xlu1 %v1912_v13, %s1362_s12 }
 0x1cc   :  { %761 = vrot.lane.b32.xlu0 %v545_v59, %s1366_s14  ;;  %731 = vrot.lane.b32.xlu1 %v544_v61, %s1365_s13 }
 0x1d0   :  { %735 = vrot.lane.b32.xlu1 %v1912_v13, %s1365_s13 }
 0x1d4   :  { %759 = vrot.lane.b32.xlu1 %v544_v61, %s1366_s14 }
 0x1d8   :  { %763 = vrot.lane.b32.xlu1 %v1912_v13, %s1366_s14 }
 0x206   :  { %v606_v19 = vpop.permute.xlu0 %605  ;;  %v549_v20 = vpop.permute.xlu1 %548 }
 0x20a   :  { %v610_v31 = vpop.permute.xlu0 %609  ;;  %v553_v32 = vpop.permute.xlu1 %552 }
 0x20e   :  { %v1951_v34 = vpop.permute.xlu0 %637  ;;  %v578_v35 = vpop.permute.xlu1 %577 }
 0x212   :  { %v1953_v37 = vpop.permute.xlu0 %701  ;;  %v582_v10 = vpop.permute.xlu1 %581 }
 0x216   :  { %v1955_v41 = vpop.permute.xlu0 %705  ;;  %v634_v42 = vpop.permute.xlu1 %633 }
 0x21a   :  { %v1957_v43 = vpop.permute.xlu0 %729  ;;  %v1959_v44 = vpop.permute.xlu1 %673 }
 0x21e   :  { %v1961_v45 = vpop.permute.xlu0 %733  ;;  %v1963_v47 = vpop.permute.xlu1 %677 }
 0x222   :  { %v551_v48 = vpop.permute.xlu0 %550  ;;  %v608_v49 = vpop.permute.xlu1 %607 }
 0x223   :  { %v557_v9 = vsel %vm2345_vm11, %v551_v48, %v553_v32  ;;  %v558_v11 = vsel %vm2346_vm2, %v549_v20, %v551_v48  ;;  %v615_v60 = vsel %vm2349_vm1, %v606_v19, %v608_v49  ;;  %vm2352_vm11 = vmmov %vm2348_vm12 }
 0x224   :  { %v562_v48 = vsel %vm1588_vm5, %v557_v9, 0.0  ;;  %vm2353_vm2 = vmmov %vm2352_vm11  ;;  %vm2357_vm5 = vnez %v2268_v17 }
 0x226   :  { %v555_v52 = vpop.permute.xlu0 %554  ;;  %v612_v53 = vpop.permute.xlu1 %611 }
 0x227   :  { %v559_v61 = vsel %vm2343_vm0, %v555_v52, %v549_v20  ;;  %v556_v1 = vsel %vm2347_vm3, %v553_v32, %v555_v52  ;;  %vm2350_vm0 = vmmov %vm2349_vm1  ;;  %v561_v32 = vsel %vm1536_vm7, %v558_v11, 0.0  ;;  %vm2355_vm3 = vcmp.ge.s32.totalorder %v1515_v25, 1 }
 0x228   :  { %v560_v54 = vsel %vm1545_vm9, %v559_v61, 0.0  ;;  %v616_v55 = vsel %vm2350_vm0, %v612_v53, %v606_v19  ;;  %v563_v19 = vsel %vm1553_vm10, %v556_v1, 0.0  ;;  %vm2354_vm9 = vcmp.ge.s32.totalorder %v1529_v30, 1  ;;  %vm2358_vm10 = vmmov %vm2350_vm0 }
 0x229   :  { %vm2356_vm7 = vcmp.ge.s32.totalorder %v1519_v27, 1  ;;  %v569_v51 = vmul.f32 %v1879_v40, %v560_v54  ;;  %v613_v39 = vsel %vm2358_vm10, %v610_v31, %v612_v53  ;;  %v570_v11 = vmul.f32 %v1879_v40, %v561_v32  ;;  %vm2360_vm1 = vmmov %vm2350_vm0 }
 0x22a   :  { %v580_v58 = vpop.permute.xlu0 %579  ;;  %v636_v59 = vpop.permute.xlu1 %635  ;;  %v614_v17 = vsel %vm2360_vm1, %v608_v49, %v610_v31  ;;  %vm2361_vm0 = vnez %v2261_v56  ;;  %v572_v1 = vmul.f32 %v1879_v40, %v563_v19  ;;  %vm2369_vm10 = vcmp.ge.s32.totalorder %v1517_v26, 1 }
 0x22b   :  { %v587_v6 = vsel %vm2344_vm14, %v578_v35, %v580_v58  ;;  %v586_v14 = vsel %vm2348_vm12, %v580_v58, %v582_v10  ;;  %vm2351_vm14 = vcmp.ge.s32.totalorder %v1511_v23, 1  ;;  %vm2359_vm12 = vcmp.lt.s32.totalorder %v1503_v15, 1 }
 0x22c   :  { %v590_v5 = vsel %vm2351_vm14, %v587_v6, 0.0  ;;  %v591_v58 = vsel %vm2354_vm9, %v586_v14, 0.0  ;;  %v618_v53 = vsel %vm2361_vm0, %v615_v60, 0.0  ;;  %vm2362_vm14 = vnez %v2265_v12 }
 0x22d   :  { %v598_v6 = vmul.f32 %v1881_v8, %v590_v5  ;;  %v599_v54 = vmul.f32 %v1881_v8, %v591_v58  ;;  %v571_v5 = vmul.f32 %v1879_v40, %v562_v48  ;;  %vm2365_vm9 = vnez %v2271_v28 }
 0x22e   :  { %v584_v57 = vpop.permute.xlu0 %583  ;;  %v640_v20 = vpop.permute.xlu1 %639  ;;  %v619_v49 = vsel %vm2365_vm9, %v614_v17, 0.0  ;;  %v626_v12 = vmul.f32 %v1941_v2, %v618_v53  ;;  %vm2371_vm1 = vcmp.lt.s32.totalorder %v1503_v15, 127  ;;  %vm2372_vm0 = vcmp.lt.s32.totalorder %v1513_v24, 15 }
 0x22f   :  { %v585_v52 = vsel %vm2352_vm11, %v582_v10, %v584_v57  ;;  %v588_v38 = vsel %vm2353_vm2, %v584_v57, %v578_v35  ;;  %v617_v10 = vsel %vm2357_vm5, %v616_v55, 0.0  ;;  %v644_v35 = vsel %vm2359_vm12, %v640_v20, %v634_v42  ;;  %vm2363_vm11 = vmmov %vm2359_vm12 }
 0x230   :  { %v589_v61 = vsel %vm2355_vm3, %v588_v38, 0.0  ;;  %v592_v33 = vsel %vm2356_vm7, %v585_v52, 0.0  ;;  %v625_v52 = vmul.f32 %v1941_v2, %v617_v10  ;;  %v602_v32 = vadd.f32 %v598_v6, %v570_v11  ;;  %vm2366_vm3 = vmmov %vm2363_vm11 }
 0x231   :  { %v597_v57 = vmul.f32 %v1881_v8, %v589_v61  ;;  %v600_v14 = vmul.f32 %v1881_v8, %v592_v33  ;;  %v620_v61 = vsel %vm2362_vm14, %v613_v39, 0.0  ;;  %v643_v31 = vsel %vm2363_vm11, %v634_v42, %v636_v59  ;;  %vm2367_vm7 = vmmov %vm2366_vm3 }
 0x232   :  { %v2011_v9 = vpop.permute.xlu1 %757  ;;  %v676_v38 = vpop.permute.xlu0 %675  ;;  %vm2364_vm2 = vcmp.ge.s32.totalorder %v1513_v24, 1  ;;  %v641_v40 = vsel %vm2366_vm3, %v1951_v34, %v640_v20  ;;  %v603_v19 = vadd.f32 %v599_v54, %v571_v5  ;;  %v642_v42 = vsel %vm2367_vm7, %v636_v59, %v1951_v34  ;;  %vm2373_vm14 = vmmov %vm2371_vm1 }
 0x233   :  { %v601_v55 = vadd.f32 %v597_v57, %v569_v51  ;;  %v645_v8 = vsel %vm2364_vm2, %v644_v35, 0.0  ;;  %v604_v56 = vadd.f32 %v600_v14, %v572_v1  ;;  %v628_v58 = vmul.f32 %v1941_v2, %v620_v61  ;;  %vm2374_vm11 = vmmov %vm2371_vm1 }
 0x234   :  { %vm2368_vm5 = vcmp.ge.s32.totalorder %v1509_v22, 1  ;;  %v653_v33 = vmul.f32 %v1883_v46, %v645_v8  ;;  %v627_v51 = vmul.f32 %v1941_v2, %v619_v49  ;;  %v630_v10 = vadd.f32 %v626_v12, %v602_v32  ;;  %vm2376_vm9 = vmmov %vm2371_vm1 }
 0x235   :  { %v629_v60 = vadd.f32 %v625_v52, %v601_v55  ;;  %v646_v28 = vsel %vm2368_vm5, %v643_v31, 0.0  ;;  %v648_v20 = vsel %vm2369_vm10, %v641_v40, 0.0  ;;  %vm2370_vm12 = vcmp.ge.s32.totalorder %v1527_v29, 1 }
 0x236   :  { %v704_v48 = vpop.permute.xlu1 %703  ;;  %v647_v6 = vsel %vm2370_vm12, %v642_v42, 0.0  ;;  %v632_v57 = vadd.f32 %v628_v58, %v604_v56  ;;  %v683_v34 = vsel %vm2371_vm1, %v1959_v44, %v676_v38  ;;  %v680_v59 = vpop.permute.xlu0 %679  ;;  %v631_v35 = vadd.f32 %v627_v51, %v603_v19 }
 0x237   :  { %v657_v39 = vadd.f32 %v653_v33, %v629_v60  ;;  %v654_v11 = vmul.f32 %v1883_v46, %v646_v28  ;;  %v656_v2 = vmul.f32 %v1883_v46, %v648_v20  ;;  %v655_v17 = vmul.f32 %v1883_v46, %v647_v6 }
 0x238   :  { %v685_v55 = vsel %vm2372_vm0, %v683_v34, 0.0  ;;  %v684_v5 = vsel %vm2373_vm14, %v680_v59, %v1959_v44  ;;  %v682_v52 = vsel %vm2374_vm11, %v676_v38, %v1963_v47  ;;  %vm2375_vm2 = vcmp.lt.s32.totalorder %v1503_v15, 113 }
 0x239   :  { %v658_v54 = vadd.f32 %v654_v11, %v630_v10  ;;  %v660_v53 = vadd.f32 %v656_v2, %v632_v57  ;;  %v669_v1 = vadd.f32 %v1888_v62, %v657_v39  ;;  %v711_v61 = vsel %vm2375_vm2, %v1953_v37, %v704_v48  ;;  %vm2379_vm5 = vmmov %vm2375_vm2 }
 0x23a   :  { %v708_v14 = vpop.permute.xlu1 %707  ;;  %v668_v24 = vmul.f32 %v1885_v50, %v1912_v13  ;;  %v659_v32 = vadd.f32 %v655_v17, %v631_v35  ;;  %v681_v44 = vsel %vm2376_vm9, %v1963_v47, %v680_v59  ;;  %vm2377_vm3 = vcmp.lt.s32.totalorder %v1503_v15, 112  ;;  %vm2380_vm10 = vmmov %vm2375_vm2 }
 0x23b   :  { %v693_v31 = vmul.f32 %v1945_v3, %v685_v55  ;;  %vm2378_vm7 = vcmp.lt.s32.totalorder %v1517_v26, 15  ;;  %v710_v8 = vsel %vm2379_vm5, %v704_v48, %v1955_v41  ;;  %v712_v50 = vsel %vm2380_vm10, %v708_v14, %v1953_v37  ;;  %vm2383_vm0 = vmmov %vm2375_vm2 }
 0x23c   :  { %v688_v38 = vsel %vm2378_vm7, %v684_v5, 0.0  ;;  %v670_v13 = vadd.f32 %v1896_v4, %v658_v54  ;;  %vm2381_vm12 = vcmp.lt.s32.totalorder %v1509_v22, 15  ;;  %vm2382_vm1 = vnez %v2316_v21  ;;  %vm2389_vm5 = vmmov %vm2377_vm3 }
 0x23d   :  { %v686_v47 = vsel %vm2381_vm12, %v682_v52, 0.0  ;;  %v713_v49 = vsel %vm2382_vm1, %v711_v61, 0.0  ;;  %v709_v26 = vsel %vm2383_vm0, %v1955_v41, %v708_v14  ;;  %v697_v56 = vadd.f32 %v693_v31, %v669_v1  ;;  %vm2390_vm10 = vmmov %vm2377_vm3  ;;  %v2395_v14 = vld [vmem:[#allocation11_spill] sm:$0xff] }
 0x23e   :  { %v732_v46 = vpop.permute.xlu1 %731  ;;  %v672_v60 = vadd.f32 %v668_v24, %v660_v53  ;;  %vm2384_vm14 = vcmp.lt.s32.totalorder %v1527_v29, 15  ;;  %vm2385_vm11 = vcmp.lt.s32.totalorder %v1515_v25, 15  ;;  %v696_v4 = vmul.f32 %v1945_v3, %v688_v38 }
 0x23f   :  { %v739_v62 = vsel %vm2377_vm3, %v1957_v43, %v732_v46  ;;  %v687_v40 = vsel %vm2384_vm14, %v681_v44, 0.0  ;;  %vm2386_vm2 = vnez %v2302_v63  ;;  %vm2387_vm9 = vnez %v2312_v18 }
 0x240   :  { %v741_v37 = vsel %vm2385_vm11, %v739_v62, 0.0  ;;  %v714_v22 = vsel %vm2386_vm2, %v710_v8, 0.0  ;;  %v716_v21 = vsel %vm2387_vm9, %v712_v50, 0.0  ;;  %v721_v12 = vmul.f32 %v1949_v16, %v713_v49 }
 0x241   :  { %vm2388_vm7 = vnez %v2320_v36  ;;  %v738_v25 = vsel %vm2389_vm5, %v732_v46, %v1961_v45  ;;  %v694_v18 = vmul.f32 %v1945_v3, %v686_v47  ;;  %v695_v19 = vmul.f32 %v1945_v3, %v687_v40 }
 0x242   :  { %v736_v48 = vpop.permute.xlu1 %735  ;;  %v715_v29 = vsel %vm2388_vm7, %v709_v26, 0.0  ;;  %v749_v42 = vmul.f32 %v1943_v7, %v741_v37  ;;  %vm2391_vm12 = vcmp.lt.s32.totalorder %v1519_v27, 15  ;;  %v671_v36 = vadd.f32 %v1893_v0, %v659_v32 }
 0x243   :  { %v740_v41 = vsel %vm2377_vm3, %v736_v48, %v1957_v43  ;;  %v737_v63 = vsel %vm2390_vm10, %v1961_v45, %v736_v48  ;;  %v722_v58 = vmul.f32 %v1949_v16, %v714_v22  ;;  %v725_v28 = vadd.f32 %v721_v12, %v697_v56 }
 0x244   :  { %v744_v43 = vsel %vm2391_vm12, %v740_v41, 0.0  ;;  %v724_v33 = vmul.f32 %v1949_v16, %v716_v21  ;;  %v723_v10 = vmul.f32 %v1949_v16, %v715_v29  ;;  %vm2392_vm1 = vcmp.lt.s32.totalorder %v1511_v23, 15 }
 0x245   :  { %v742_v45 = vsel %vm2392_vm1, %v738_v25, 0.0  ;;  %vm2393_vm0 = vcmp.lt.s32.totalorder %v1529_v30, 15  ;;  %v700_v0 = vadd.f32 %v696_v4, %v672_v60  ;;  %v752_v6 = vmul.f32 %v1943_v7, %v744_v43 }
 0x246   :  { %v760_v51 = vpop.permute.xlu1 %759  ;;  %v743_v3 = vsel %vm2393_vm0, %v737_v63, 0.0  ;;  %v698_v34 = vadd.f32 %v694_v18, %v670_v13  ;;  %v699_v59 = vadd.f32 %v695_v19, %v671_v36  ;;  %v753_v16 = vadd.f32 %v749_v42, %v725_v28 }
 0x247   :  { %v767_v27 = vsel %vm306_vm8, %v2011_v9, %v760_v51  ;;  %v789_v20 = vpop.permute.xlu0 %788  ;;  %v728_v35 = vadd.f32 %v724_v33, %v700_v0  ;;  %v750_v30 = vmul.f32 %v1943_v7, %v742_v45  ;;  %v751_v11 = vmul.f32 %v1943_v7, %v743_v3  ;;  %v823_v3 = vld [vmem:[%s2209_s5] sm:$0xff] }
 0x248   :  { %v769_v39 = vsel %vm1839_vm15, %v767_v27, 0.0  ;;  %v726_v17 = vadd.f32 %v722_v58, %v698_v34  ;;  %v727_v54 = vadd.f32 %v723_v10, %v699_v59 }
 0x249   :  { %v777_v23 = vmul.f32 %v2395_v14, %v769_v39  ;;  %v756_v1 = vadd.f32 %v752_v6, %v728_v35 }
 0x24a   :  { %v764_v2 = vpop.permute.xlu1 %763  ;;  %v754_v38 = vadd.f32 %v750_v30, %v726_v17  ;;  %v755_v8 = vadd.f32 %v751_v11, %v727_v54 }
 0x24b   :  { %v781_v55 = vadd.f32 %v777_v23, %v753_v16  ;;  %v768_v5 = vsel %vm306_vm8, %v764_v2, %v2011_v9  ;;  %v762_v53 = vpop.permute.xlu0 %761 }
 0x24c   :  { %v772_v61 = vsel %vm1830_vm6, %v768_v5, 0.0  ;;  %v765_v46 = vsel %vm306_vm8, %v762_v53, %v764_v2  ;;  %v766_v24 = vsel %vm306_vm8, %v760_v51, %v762_v53  ;;  %vm832_vm6 = vcmask 7168  }
 0x24d   :  { %v780_v7 = vmul.f32 %v2395_v14, %v772_v61  ;;  %v770_v44 = vsel %vm1820_vm13, %v766_v24, 0.0  ;;  %v771_v31 = vsel %vm1847_vm4, %v765_v46, 0.0  ;;  %v791_v9 = vadd.f32 %v789_v20, %v781_v55  ;;  %v824_v55 = vld [vmem:[#allocation3] sm:$0x1] }
 0x24e   :  { %v778_v50 = vmul.f32 %v2395_v14, %v770_v44  ;;  %v779_v13 = vmul.f32 %v2395_v14, %v771_v31  ;;  %v2399_v31 = vlaneseq  ;;  %vm915_vm13 = vcmask 64512  }
 0x24f   :  { %v784_v47 = vadd.f32 %v780_v7, %v756_v1  ;;  %v1089_v49 = vmul.f32 -1.442695, %v791_v9 }
 0x250   :  { %v782_v26 = vadd.f32 %v778_v50, %v754_v38  ;;  %v783_v15 = vadd.f32 %v779_v13, %v755_v8 }
 0x251   :  { %v794_v56 = vadd.f32 %v789_v20, %v784_v47  ;;  %1297 = vpow2.f32 %v1089_v49  ;;  %v825_v47 = vld [vmem:[%s2211_s7] sm:$0xff] }
 0x252   :  { %v793_v60 = vadd.f32 %v789_v20, %v783_v15  ;;  %v792_v40 = vadd.f32 %v789_v20, %v782_v26  ;;  %v826_v15 = vld [vmem:[%s2212_s8] sm:$0xff] }
 0x253   :  { %v1092_v37 = vmul.f32 -1.442695, %v794_v56 }
 0x254   :  { %v1091_v48 = vmul.f32 -1.442695, %v793_v60  ;;  %v1090_v4 = vmul.f32 -1.442695, %v792_v40 }
 0x255   :  { %1299 = vpow2.f32 %v1092_v37 }
 0x256   :  { %1301 = vpow2.f32 %v1091_v48 }
 0x257   :  { %1303 = vpow2.f32 %v1090_v4 }
 0x25b   :  { %v1298_v22 = vpop.eup %1297 }
 0x25c   :  { %v807_v21 = vadd.f32 1.0, %v1298_v22 }
 0x25e   :  { %1305 = vrcp.f32 %v807_v21 }
 0x25f   :  { %v1300_v41 = vpop.eup %1299 }
 0x260   :  { %v1302_v12 = vpop.eup %1301  ;;  %v810_v29 = vadd.f32 1.0, %v1300_v41 }
 0x261   :  { %v1304_v25 = vpop.eup %1303  ;;  %v809_v63 = vadd.f32 1.0, %v1302_v12 }
 0x262   :  { %1307 = vrcp.f32 %v810_v29  ;;  %v808_v18 = vadd.f32 1.0, %v1304_v25 }
 0x263   :  { %1309 = vrcp.f32 %v809_v63 }
 0x264   :  { %1311 = vrcp.f32 %v808_v18  ;;  %v909_v18 = vld [vmem:[%s2214_s10] sm:$0xff]  ;;  %s1376_s10 = smov [#allocation4]  }
 0x265   :  { %s1075_s25 = sshll.u32 %s1376_s10, 4  ;;  %s1076_s25 = int_to_ptr.vmem [resolvable:$true] %s1075_s25 }
 0x266   :  { %s1333_s14 = scalar_lea.vmem %s1076_s25, 512  ;;  %p1338_p1 = scmp.lt.s32.totalorder %s1076_s25, %s1076_s25 }
 0x267   :  { %p1334_p0 = scmp.ne.s32.totalorder %s1076_s25, %s1333_s14  ;;  %p1339_p2 = scmp.lt.s32.totalorder %s1333_s14, %s1333_s14 }
 0x268   :  { %v1306_v19 = vpop.eup %1305 }
 0x269   :  { %v2152_v33 = vmul.f32 %v1306_v19, %v791_v9  ;;  %v849_v9 = vshrl.u32 %v2399_v31, 7  ;;  %p1340_p3 = por %p1339_p2, %p1338_p1 }
 0x26b   :  { %v850_v38 = vsub.s32 0, %v849_v9  ;;  %p1341_p4 = pnand %p1340_p3, %p1334_p0 }
 0x26c   :  { %v1308_v42 = vpop.eup %1307 }
 0x26d   :  { %v1310_v43 = vpop.eup %1309  ;;  %v2148_v36 = vmul.f32 %v1308_v42, %v794_v56 }
 0x26e   :  { %v1312_v58 = vpop.eup %1311  ;;  %v2150_v28 = vmul.f32 %v1310_v43, %v793_v60 }
 0x26f   :  { %v2154_v51 = vmul.f32 %v1312_v58, %v792_v40 }
 0x270   :  { %v866_v10 = vadd.f32 %v2148_v36, %v2150_v28 }
 0x271   :  { %v827_v45 = vadd.f32 %v2154_v51, %v2152_v33 }
 0x272   :  { %867 = vadd.xlane.f32.xlu1 %v866_v10 }
 0x273   :  { %828 = vadd.xlane.f32.xlu0 %v827_v45 }
 0x2ff   :  { %v868_v27 = vpop.xlane.xlu1 %867 }
 0x300   :  { %v869_v20 = vmul.f32 0.00390625, %v868_v27  ;;  %v829_v0 = vpop.xlane.xlu0 %828 }
 0x301   :  { %v830_v6 = vmul.f32 0.00390625, %v829_v0 }
 0x302   :  { %v870_v57 = vmul.f32 %v869_v20, %v823_v3 }
 0x303   :  { %v831_v39 = vmul.f32 %v830_v6, %v823_v3  ;;  %v908_v3 = vld [vmem:[%s2213_s9] sm:$0xff] }
 0x304   :  { %v871_v34 = vsel %vm832_vm6, %v870_v57, 0.0 }
 0x305   :  { %v872_v59 = vrot.slane %v871_v34, 4  ;;  %v833_v16 = vsel %vm832_vm6, %v831_v39, 0.0 }
 0x306   :  { %v834_v14 = vrot.slane %v833_v16, 4 }
 0x307   :  { %v873_v23 = vadd.f32 %v872_v59, %v871_v34  ;;  %v1330_v59 = vld [vmem:[%s2204_s0] sm:$0xff] }
 0x308   :  { %v835_v35 = vadd.f32 %v834_v14, %v833_v16  ;;  %v1331_v14 = vld [vmem:[%s2204_s0 + $0x18] sm:$0xff] }
 0x309   :  { %v874_v30 = vrot.slane %v873_v23, 2 }
 0x30a   :  { %v836_v11 = vrot.slane %v835_v35, 2 }
 0x30b   :  { %v875_v2 = vadd.f32 %v874_v30, %v873_v23 }
 0x30c   :  { %v837_v17 = vadd.f32 %v836_v11, %v835_v35  ;;  %v1332_v35 = vld [vmem:[%s2204_s0 + $0x8] sm:$0xff] }
 0x30d   :  { %v876_v54 = vrot.slane %v875_v2, 1 }
 0x30e   :  { %v838_v5 = vrot.slane %v837_v17, 1 }
 0x30f   :  { %v877_v53 = vadd.f32 %v876_v54, %v875_v2 }
 0x310   :  { %v839_v1 = vadd.f32 %v838_v5, %v837_v17 }
 0x311   :  { %v878_v52 = vadd.f32 %v877_v53, %v824_v55 }
 0x312   :  { %v840_v61 = vadd.f32 %v839_v1, %v824_v55 }
 0x313   :  { %v1095_v46 = vmul.f32 -1.442695, %v878_v52 }
 0x314   :  { %v1093_v24 = vmul.f32 -1.442695, %v840_v61 }
 0x315   :  { %1313 = vpow2.f32 %v1095_v46 }
 0x316   :  { %1315 = vpow2.f32 %v1093_v24 }
 0x31f   :  { %v1314_v7 = vpop.eup %1313 }
 0x320   :  { %v1316_v32 = vpop.eup %1315  ;;  %v882_v44 = vadd.f32 1.0, %v1314_v7 }
 0x321   :  { %v844_v62 = vadd.f32 1.0, %v1316_v32 }
 0x322   :  { %1317 = vrcp.f32 %v882_v44 }
 0x323   :  { %1319 = vrcp.f32 %v844_v62 }
 0x32c   :  { %v1318_v8 = vpop.eup %1317 }
 0x32d   :  { %v1320_v50 = vpop.eup %1319  ;;  %v885_v13 = vmul.f32 %v1318_v8, %v878_v52 }
 0x32e   :  { %v847_v49 = vmul.f32 %v1320_v50, %v840_v61 }
 0x32f   :  { %v889_v26 = vrot.slane %v885_v13, %v850_v38 }
 0x330   :  { %v851_v56 = vrot.slane %v847_v49, %v850_v38 }
 0x331   :  { %v890_v60 = vmul.f32 %v889_v26, %v825_v47 }
 0x332   :  { %v852_v40 = vmul.f32 %v851_v56, %v825_v47 }
 0x333   :  { %v892_v37 = vadd.f32 %v890_v60, %v826_v15 }
 0x334   :  { %v854_v48 = vadd.f32 %v852_v40, %v826_v15 }
 0x335   :  { %v1096_v4 = vmul.f32 -1.442695, %v892_v37 }
 0x336   :  { %v1094_v22 = vmul.f32 -1.442695, %v854_v48 }
 0x337   :  { %1321 = vpow2.f32 %v1096_v4 }
 0x338   :  { %1323 = vpow2.f32 %v1094_v22 }
 0x341   :  { %v1322_v21 = vpop.eup %1321 }
 0x342   :  { %v1324_v41 = vpop.eup %1323  ;;  %v896_v12 = vadd.f32 1.0, %v1322_v21 }
 0x343   :  { %v858_v29 = vadd.f32 1.0, %v1324_v41 }
 0x344   :  { %1325 = vrcp.f32 %v896_v12 }
 0x345   :  { %1327 = vrcp.f32 %v858_v29 }
 0x34e   :  { %v1326_v25 = vpop.eup %1325 }
 0x34f   :  { %v1328_v63 = vpop.eup %1327  ;;  %901 = vperm.xlu1 %1280, %v1326_v25  }
 0x350   :  { %863 = vperm.xlu0 %1279, %v1328_v63  }
 0x354   :  { %912 = vperm.xlu0 %1279, %v909_v18  }
 0x3ce   :  { %v902_v19 = vpop.permute.xlu1 %901 }
 0x3cf   :  { %v906_v42 = vmul.f32 %v902_v19, %v2150_v28  ;;  %v907_v43 = vmul.f32 %v902_v19, %v2148_v36  ;;  %v864_v58 = vpop.permute.xlu0 %863 }
 0x3d0   :  { %v904_v10 = vmul.f32 %v864_v58, %v2152_v33  ;;  %v905_v45 = vmul.f32 %v864_v58, %v2154_v51  ;;  %v1329_v51 = vld [vmem:[%s2204_s0 + $0x10] sm:$0xff] }
 0x3d1   :  { %990 = vmatprep.subr.mxu1 %v907_v43 }
 0x3d2   :  { %919 = vmatprep.subr.mxu0 %v905_v45  ;;  %991 = vmatpush1.msra.mxu1 %v906_v42 }
 0x3d3   :  { %920 = vmatpush1.msra.mxu0 %v904_v10  ;;  %1098 = vmatmul.mubr.msk.f32.vlgmr.msra.gmra.mrb[2].mxu1 %vm915_vm13, %v908_v3  ;;  %v913_v27 = vpop.permute.xlu0 %912 }
 0x3d4   :  { %1097 = vmatmul.mubr.msk.f32.vlgmr.msra.gmra.mrb[2].mxu0 %vm915_vm13, %v908_v3 }
 0x4a6   :  { %v1056_v28 = vpop.f32.mrb[2].mxu1 }
 0x4a7   :  { %v985_v20 = vpop.f32.mrb[2].mxu0  ;;  %v1057_v36 = vadd.f32 %v1056_v28, %v913_v27  ;;  %v1058_v0 = vpop.f32.mrb[3].mxu1 }
 0x4a8   :  { %v986_v6 = vadd.f32 %v985_v20, %v913_v27  ;;  %v987_v33 = vpop.f32.mrb[3].mxu0  ;;  %v1059_v57 = vadd.f32 %v1058_v0, %v913_v27 }
 0x4a9   :  { %v1063_v39 = vadd.f32 %v1329_v51, %v1057_v36  ;;  %v988_v34 = vadd.f32 %v987_v33, %v913_v27 }
 0x4aa   :  { %v1061_v16 = vadd.f32 %v1330_v59, %v986_v6  ;;  %v1064_v23 = vadd.f32 %v1331_v14, %v1059_v57 }
 0x4ab   :  { %1067 = vst [vmem:[#allocation4 + $0x10] sm:$0xff] %v1063_v39  ;;  %v1062_v30 = vadd.f32 %v1332_v35, %v988_v34 }
 0x4ac   :  { %1065 = vst [vmem:[#allocation4] sm:$0xff] %v1061_v16  ;;  %1068 = vst [vmem:[#allocation4 + $0x18] sm:$0xff] %v1064_v23 }
 0x4ad   :  { %1066 = vst [vmem:[#allocation4 + $0x8] sm:$0xff] %v1062_v30 }
 0x4ae   :  { %1344 = shalt.err (!%p1341_p4)
}
 0x4af   :  { %s1345_s17 = scalar_lea.hbm %s2215_s11, 512 }
 0x4b0   :  { %p1346_p5 = scmp.ne.s32.totalorder %s2215_s11, %s1345_s17  ;;  %p1349_p6 = scmp.lt.u32.totalorder %s1345_s17, %s2215_s11 }
 0x4b2   :  { %p1351_p7 = pnand %p1349_p6, %p1346_p5 }
 0x4b4   :  { %1354 = shalt.err (!%p1351_p7)
}
 0x4b5   :  { %1078 = dma.vmem_to_hbm [thread:$0]  %s1076_s25, 512, %s2215_s11, [#allocation5]  }
 0x4b6   :  { %1355 = dma.done.wait [#allocation5], 512  }
 0x4b7   :  { %1356 = vsyncadd [#allocation5], 4294966784 }
 0x4b8   :  { %1082 = vsyncpa [#allocation5], 1 }

</bundles_post_ra>
